<compile_context>
chip_gen: v5e
topology: v5e:2x2
jax: 0.10.0
libtpu: 0.0.40
codegen_flags: <defaults>
</compile_context>

<pallas_src>
import math

import jax
import jax.numpy as jnp
from jax.experimental import pallas as pl
from jax.experimental.pallas import tpu as pltpu


# -----------------------------------------------------------------------------
# Banded weight matrix for the W-banded im2col conv.
#
#   Wmat[(kd*3+kh)*(W+2)*Cin + wi*Cin + ci, wo*Cout + co] =
#       w[co, ci, kd, kh, kw]   if wi == wo + kw   else 0
#
# With col[row=(d*H+h), (kd*3+kh)*(W+2)*Cin + wi*Cin + ci] = x_pad[d+kd, h+kh, wi, ci],
# col @ Wmat reproduces the 3x3x3 "SAME" conv exactly (the halo is zero).
# If perm_even_odd=True the output columns are reordered so all even w come
# first, then all odd w (consumed by the maxpool kernel).
# -----------------------------------------------------------------------------
def _make_banded_weight(w, W, perm_even_odd=False):
    Cout, Cin = w.shape[0], w.shape[1]
    taps = jnp.transpose(w, (2, 3, 4, 1, 0))          # (kd, kh, kw, Cin, Cout)
    taps = taps.reshape(9, 3, Cin, Cout)              # ((kd,kh), kw, Cin, Cout)
    wi = jnp.arange(W + 2)
    wo = jnp.arange(W)
    kw = jnp.arange(3)
    ind = (wi[None, None, :] == (wo[None, :, None] + kw[:, None, None]))
    ind = ind.astype(w.dtype)                         # (kw, wo, wi)
    # m[j, wi, ci, wo, co] = sum_kw ind[kw, wo, wi] * taps[j, kw, ci, co]
    m = jnp.einsum("kow,jkic->jwioc", ind, taps)      # (9, W+2, Cin, W, Cout)
    if perm_even_odd:
        order = jnp.concatenate([jnp.arange(0, W, 2), jnp.arange(1, W, 2)])
        m = m[:, :, :, order, :]
    return m.reshape(9 * (W + 2) * Cin, W * Cout)


# -----------------------------------------------------------------------------
# Kernel 1: fused [per-channel input affine] -> zero-pad -> 3x3x3 conv -> ELU,
# plus per-sample column sums / sums-of-squares for BatchNorm statistics.
# Activations are lane-flat: last dim is W*C.
# -----------------------------------------------------------------------------
def conv3d_elu(x_flat, wmat, in_scale, in_shift, D, H, W, Cin, Cout):
    # x_flat : (N, D, H, W*Cin)     lane-flat input (natural w order)
    # wmat   : (9*(W+2)*Cin, W*Cout) banded weights
    # in_scale/in_shift : (1, W*Cin) per-channel affine tiled over W
    #                                (identity for conv1; BN1 affine for conv2)
    N = x_flat.shape[0]
    KB = (W + 2) * Cin

    def kernel(x_ref, sc_ref, sh_ref, w_ref, y_ref, s_ref, q_ref,
               xp_ref, col_ref):
        # xp_ref : VMEM (D+2, H+2, (W+2)*Cin)  zero-padded, affined input
        # col_ref: VMEM (D*H, 9*(W+2)*Cin)     im2col staging buffer
        # Zero the whole padded scratch each step (safe under "parallel"
        # semantics / megacore), then write the affined interior; halo stays 0,
        # which exactly reproduces "BN -> zero-pad -> conv".
        xp_ref[...] = jnp.zeros_like(xp_ref)
        xp_ref[1:D + 1, 1:H + 1, Cin:Cin + W * Cin] = (
            x_ref[0] * sc_ref[...] + sh_ref[...])

        # im2col: 9 full-lane-width slabs (one per (kd, kh) tap pair); each slab
        # carries the whole padded W row, so the single matmul below has
        # K = 9*(W+2)*Cin and a lane-dense N = W*Cout output.
        for kd in range(3):
            for kh in range(3):
                j = kd * 3 + kh
                col_ref[:, j * KB:(j + 1) * KB] = (
                    xp_ref[kd:kd + D, kh:kh + H, :].reshape(D * H, KB))

        # One MXU matmul: (D*H, 9*(W+2)*Cin) @ (9*(W+2)*Cin, W*Cout)
        acc = jnp.dot(col_ref[...], w_ref[...],
                      preferred_element_type=jnp.float32)

        # ELU (alpha = 1.0)
        y = jnp.where(acc > 0.0, acc, jnp.exp(jnp.minimum(acc, 0.0)) - 1.0)

        y_ref[...] = y.reshape(1, D, H, W * Cout)
        # Per-(w, c) column statistics; the wrapper reduces over N and W.
        s_ref[...] = jnp.sum(y, axis=0).reshape(1, 1, W * Cout)
        q_ref[...] = jnp.sum(y * y, axis=0).reshape(1, 1, W * Cout)

    out_shape = (
        jax.ShapeDtypeStruct((N, D, H, W * Cout), jnp.float32),
        jax.ShapeDtypeStruct((N, 1, W * Cout), jnp.float32),
        jax.ShapeDtypeStruct((N, 1, W * Cout), jnp.float32),
    )
    y, s, q = pl.pallas_call(
        kernel,
        out_shape=out_shape,
        grid_spec=pltpu.PrefetchScalarGridSpec(
            num_scalar_prefetch=0,
            grid=(N,),
            in_specs=[
                pl.BlockSpec((1, D, H, W * Cin), lambda n: (n, 0, 0, 0)),
                pl.BlockSpec((1, W * Cin), lambda n: (0, 0)),
                pl.BlockSpec((1, W * Cin), lambda n: (0, 0)),
                pl.BlockSpec((9 * KB, W * Cout), lambda n: (0, 0)),
            ],
            out_specs=[
                pl.BlockSpec((1, D, H, W * Cout), lambda n: (n, 0, 0, 0)),
                pl.BlockSpec((1, 1, W * Cout), lambda n: (n, 0, 0)),
                pl.BlockSpec((1, 1, W * Cout), lambda n: (n, 0, 0)),
            ],
            scratch_shapes=[
                pltpu.VMEM((D + 2, H + 2, (W + 2) * Cin), jnp.float32),
                pltpu.VMEM((D * H, 9 * KB), jnp.float32),
            ],
        ),
        compiler_params=pltpu.CompilerParams(
            dimension_semantics=("parallel",)),
    )(x_flat, in_scale, in_shift, wmat)
    return y, s, q


# -----------------------------------------------------------------------------
# Kernel 2: fused BatchNorm affine + MaxPool3d(2, 2).
# Input is lane-flat with w-columns ordered [0,2,...,W-2, 1,3,...,W-1], so the
# W pooling is a single jnp.maximum of the two lane halves.
# -----------------------------------------------------------------------------
def maxpool2_bn(y_perm, scale, shift, D, H, W, C):
    # y_perm: (N, D, H, W*C)  conv2 output, even-w-then-odd-w lane order
    # scale/shift: (1, W*C)   per-channel BN affine tiled over W
    N = y_perm.shape[0]
    half = (W // 2) * C

    def kernel(x_ref, sc_ref, sh_ref, o_ref):
        # Apply the BN affine elementwise BEFORE the max -> exact for any gamma.
        v = x_ref[0] * sc_ref[...] + sh_ref[...]
        v = jnp.max(v.reshape(D // 2, 2, H, W * C), axis=1)       # pool D
        v = jnp.max(v.reshape(D // 2, H // 2, 2, W * C), axis=2)  # pool H
        # pool W: even-w half vs odd-w half (result lands in natural w order)
        v = jnp.maximum(v[..., :half], v[..., half:])
        o_ref[...] = v.reshape(1, D // 2, H // 2, half)

    return pl.pallas_call(
        kernel,
        out_shape=jax.ShapeDtypeStruct((N, D // 2, H // 2, half), jnp.float32),
        grid_spec=pltpu.PrefetchScalarGridSpec(
            num_scalar_prefetch=0,
            grid=(N,),
            in_specs=[
                pl.BlockSpec((1, D, H, W * C), lambda n: (n, 0, 0, 0)),
                pl.BlockSpec((1, W * C), lambda n: (0, 0)),
                pl.BlockSpec((1, W * C), lambda n: (0, 0)),
            ],
            out_specs=pl.BlockSpec((1, D // 2, H // 2, half),
                                   lambda n: (n, 0, 0, 0)),
        ),
        compiler_params=pltpu.CompilerParams(
            dimension_semantics=("parallel",)),
    )(y_perm, scale, shift)


# -----------------------------------------------------------------------------
# BatchNorm helpers (PyTorch training-mode forward: batch stats, biased var,
# eps=1e-5).  Stats come from the column sums emitted by the conv kernel.
# NOTE: var = E[x^2] - E[x]^2 in f32; fine at this scale (see review note).
# -----------------------------------------------------------------------------
def _batch_stats(s, q, W, C, count):
    s_c = jnp.sum(s, axis=(0, 1)).reshape(W, C).sum(axis=0)
    q_c = jnp.sum(q, axis=(0, 1)).reshape(W, C).sum(axis=0)
    mean = s_c / count
    var = jnp.maximum(q_c / count - mean * mean, 0.0)
    return mean, var


def _bn_scale_shift(mean, var, gamma, beta, eps=1e-5):
    scale = gamma / jnp.sqrt(var + eps)
    shift = beta - mean * scale
    return scale, shift


def _tile_channels(v, W):
    # per-channel (C,) -> lane-flat (1, W*C), periodic in C (w-order agnostic)
    return jnp.tile(v, W).reshape(1, -1)


# -----------------------------------------------------------------------------
# Parameters and full forward.
# -----------------------------------------------------------------------------
def init_params(key, cin, cout):
    k1, k2 = jax.random.split(key)
    b1 = 1.0 / math.sqrt(cin * 27)    # PyTorch kaiming_uniform(a=sqrt(5)) bound
    b2 = 1.0 / math.sqrt(cout * 27)
    w1 = jax.random.uniform(k1, (cout, cin, 3, 3, 3), jnp.float32, -b1, b1)
    w2 = jax.random.uniform(k2, (cout, cout, 3, 3, 3), jnp.float32, -b2, b2)
    return {
        "w1": w1, "w2": w2,                                  # torch layout
        "gamma1": jnp.ones((cout,), jnp.float32),
        "beta1": jnp.zeros((cout,), jnp.float32),
        "gamma2": jnp.ones((cout,), jnp.float32),
        "beta2": jnp.zeros((cout,), jnp.float32),
    }


def conv_block_forward(x_ncdhw, params, eps=1e-5):
    # NCDHW (PyTorch) -> lane-flat NDH(WC) for the kernels -> back to NCDHW.
    x = jnp.transpose(x_ncdhw, (0, 2, 3, 4, 1)).astype(jnp.float32)
    N, D, H, W, Cin = x.shape
    Cout = params["w1"].shape[0]
    assert D % 2 == 0 and H % 2 == 0 and W % 2 == 0, "MaxPool3d(2,2) needs even dims"
    x_flat = x.reshape(N, D, H, W * Cin)

    w1mat = _make_banded_weight(params["w1"], W)                      # natural w order
    w2mat = _make_banded_weight(params["w2"], W, perm_even_odd=True)  # for maxpool

    # conv1 + ELU (identity input affine)
    ones = jnp.ones((1, W * Cin), jnp.float32)
    zeros = jnp.zeros((1, W * Cin), jnp.float32)
    y1, s1, q1 = conv3d_elu(x_flat, w1mat, ones, zeros, D, H, W, Cin, Cout)

    # BN1 (batch stats), fused as an input affine into conv2 (halo stays zero).
    count = float(N * D * H * W)
    m1, v1 = _batch_stats(s1, q1, W, Cout, count)
    sc1, sh1 = _bn_scale_shift(m1, v1, params["gamma1"], params["beta1"], eps)
    y2, s2, q2 = conv3d_elu(y1, w2mat, _tile_channels(sc1, W),
                            _tile_channels(sh1, W), D, H, W, Cout, Cout)

    # BN2 affine fused into the maxpool kernel.
    m2, v2 = _batch_stats(s2, q2, W, Cout, count)
    sc2, sh2 = _bn_scale_shift(m2, v2, params["gamma2"], params["beta2"], eps)
    p = maxpool2_bn(y2, _tile_channels(sc2, W), _tile_channels(sh2, W),
                    D, H, W, Cout)                                    # (N,D/2,H/2,(W/2)*C)

    p = p.reshape(N, D // 2, H // 2, W // 2, Cout)
    return jnp.transpose(p, (0, 4, 1, 2, 3))                          # NCDHW


# -----------------------------------------------------------------------------
# Pure-JAX reference (sanity check of the whole block).
# -----------------------------------------------------------------------------
def reference_forward(x_ncdhw, params, eps=1e-5):
    x = jnp.transpose(x_ncdhw, (0, 2, 3, 4, 1)).astype(jnp.float32)

    def conv(v, w):
        w_dhwio = jnp.transpose(w, (2, 3, 4, 1, 0))
        return jax.lax.conv_general_dilated(
            v, w_dhwio, window_strides=(1, 1, 1), padding="SAME",
            dimension_numbers=("NDHWC", "DHWIO", "NDHWC"))

    def bn(v, gamma, beta):
        mean = jnp.mean(v, axis=(0, 1, 2, 3))
        var = jnp.mean((v - mean) ** 2, axis=(0, 1, 2, 3))
        return (v - mean) / jnp.sqrt(var + eps) * gamma + beta

    y = bn(jax.nn.elu(conv(x, params["w1"])), params["gamma1"], params["beta1"])
    y = bn(jax.nn.elu(conv(y, params["w2"])), params["gamma2"], params["beta2"])
    N, D, H, W, C = y.shape
    y = y.reshape(N, D // 2, 2, H // 2, 2, W // 2, 2, C).max(axis=(2, 4, 6))
    return jnp.transpose(y, (0, 4, 1, 2, 3))


if __name__ == "__main__":
    key = jax.random.PRNGKey(0)
    kx, kp = jax.random.split(key)

    N, Cin, Cout, S = 2, 4, 8, 8
    x = jax.random.normal(kx, (N, Cin, S, S, S), jnp.float32)   # NCDHW
    params = init_params(kp, Cin, Cout)

    out = jax.block_until_ready(conv_block_forward(x, params))
    ref = jax.block_until_ready(reference_forward(x, params))

    assert out.shape == (N, Cout, S // 2, S // 2, S // 2), out.shape
    max_err = float(jnp.max(jnp.abs(out - ref)))
    if max_err > 2e-3:
        raise SystemExit(f"mismatch vs reference, max abs err = {max_err}")

    print("KERNEL_OK")
</pallas_src>

<mosaic_0001>
module attributes {stable_mosaic.version = 11 : i64} {
  func.func @kernel(%arg0: i32, %arg1: memref<1x8x8x32xf32, #tpu.memory_space<vmem>>, %arg2: memref<1x32xf32, #tpu.memory_space<vmem>>, %arg3: memref<1x32xf32, #tpu.memory_space<vmem>>, %arg4: memref<360x64xf32, #tpu.memory_space<vmem>>, %arg5: memref<1x8x8x64xf32, #tpu.memory_space<vmem>>, %arg6: memref<1x1x64xf32, #tpu.memory_space<vmem>>, %arg7: memref<1x1x64xf32, #tpu.memory_space<vmem>>, %arg8: memref<10x10x40xf32, #tpu.memory_space<vmem>>, %arg9: memref<64x360xf32, #tpu.memory_space<vmem>>) attributes {dimension_semantics = [#tpu.dimension_semantics<parallel>], iteration_bounds = array<i64: 2>, scalar_prefetch = 0 : i64, scratch_operands = 2 : i64, tpu.core_type = #tpu.core_type<tc>, window_params = [{transform_indices = @transform_0, window_bounds = array<i64: 1, 8, 8, 32>}, {pipeline_mode = #tpu.pipeline_mode<synchronous>, transform_indices = @transform_1, window_bounds = array<i64: 1, 32>}, {pipeline_mode = #tpu.pipeline_mode<synchronous>, transform_indices = @transform_2, window_bounds = array<i64: 1, 32>}, {pipeline_mode = #tpu.pipeline_mode<synchronous>, transform_indices = @transform_3, window_bounds = array<i64: 360, 64>}, {transform_indices = @transform_4, window_bounds = array<i64: 1, 8, 8, 64>}, {transform_indices = @transform_5, window_bounds = array<i64: 1, 1, 64>}, {transform_indices = @transform_6, window_bounds = array<i64: 1, 1, 64>}]} {
    %cst = arith.constant 0.000000e+00 : f32
    %0 = vector.broadcast %cst : f32 to vector<10x10x40xf32>
    %c0 = arith.constant 0 : index
    %c0_0 = arith.constant 0 : index
    %c0_1 = arith.constant 0 : index
    %1 = vector.load %arg8[%c0, %c0_0, %c0_1] : memref<10x10x40xf32, #tpu.memory_space<vmem>>, vector<10x10x40xf32>
    tpu.vector_store %arg8[%c0, %c0_0, %c0_1], %0 {strides = array<i32>} : memref<10x10x40xf32, #tpu.memory_space<vmem>>, vector<10x10x40xf32>,
    %c0_2 = arith.constant 0 : index
    %c0_3 = arith.constant 0 : index
    %c0_4 = arith.constant 0 : index
    %c0_5 = arith.constant 0 : index
    %2 = vector.load %arg1[%c0_2, %c0_3, %c0_4, %c0_5] : memref<1x8x8x32xf32, #tpu.memory_space<vmem>>, vector<1x8x8x32xf32>
    %3 = vector.shape_cast %2 : vector<1x8x8x32xf32> to vector<8x8x32xf32>
    %c0_6 = arith.constant 0 : index
    %c0_7 = arith.constant 0 : index
    %4 = vector.load %arg2[%c0_6, %c0_7] : memref<1x32xf32, #tpu.memory_space<vmem>>, vector<1x32xf32>
    %5 = vector.shape_cast %4 : vector<1x32xf32> to vector<1x1x32xf32>
    %6 = vector.broadcast %5 : vector<1x1x32xf32> to vector<8x8x32xf32>
    %7 = arith.mulf %3, %6 : vector<8x8x32xf32>
    %c0_8 = arith.constant 0 : index
    %c0_9 = arith.constant 0 : index
    %8 = vector.load %arg3[%c0_8, %c0_9] : memref<1x32xf32, #tpu.memory_space<vmem>>, vector<1x32xf32>
    %9 = vector.shape_cast %8 : vector<1x32xf32> to vector<1x1x32xf32>
    %10 = vector.broadcast %9 : vector<1x1x32xf32> to vector<8x8x32xf32>
    %11 = arith.addf %7, %10 : vector<8x8x32xf32>
    %c1 = arith.constant 1 : index
    %c1_10 = arith.constant 1 : index
    %c4 = arith.constant 4 : index
    %12 = vector.load %arg8[%c1, %c1_10, %c4] : memref<10x10x40xf32, #tpu.memory_space<vmem>>, vector<8x8x32xf32>
    tpu.vector_store %arg8[%c1, %c1_10, %c4], %11 {strides = array<i32>} : memref<10x10x40xf32, #tpu.memory_space<vmem>>, vector<8x8x32xf32>,
    %c0_11 = arith.constant 0 : index
    %c0_12 = arith.constant 0 : index
    %c0_13 = arith.constant 0 : index
    %13 = vector.load %arg8[%c0_11, %c0_12, %c0_13] : memref<10x10x40xf32, #tpu.memory_space<vmem>>, vector<8x8x40xf32>
    %14 = vector.shape_cast %13 : vector<8x8x40xf32> to vector<64x40xf32>
    %c0_14 = arith.constant 0 : index
    %c0_15 = arith.constant 0 : index
    %15 = vector.load %arg9[%c0_14, %c0_15] : memref<64x360xf32, #tpu.memory_space<vmem>>, vector<64x40xf32>
    tpu.vector_store %arg9[%c0_14, %c0_15], %14 {strides = array<i32>} : memref<64x360xf32, #tpu.memory_space<vmem>>, vector<64x40xf32>,
    %c0_16 = arith.constant 0 : index
    %c1_17 = arith.constant 1 : index
    %c0_18 = arith.constant 0 : index
    %16 = vector.load %arg8[%c0_16, %c1_17, %c0_18] : memref<10x10x40xf32, #tpu.memory_space<vmem>>, vector<8x8x40xf32>
    %17 = vector.shape_cast %16 : vector<8x8x40xf32> to vector<64x40xf32>
    %c0_19 = arith.constant 0 : index
    %c40 = arith.constant 40 : index
    %18 = vector.load %arg9[%c0_19, %c40] : memref<64x360xf32, #tpu.memory_space<vmem>>, vector<64x40xf32>
    tpu.vector_store %arg9[%c0_19, %c40], %17 {strides = array<i32>} : memref<64x360xf32, #tpu.memory_space<vmem>>, vector<64x40xf32>,
    %c0_20 = arith.constant 0 : index
    %c2 = arith.constant 2 : index
    %c0_21 = arith.constant 0 : index
    %19 = vector.load %arg8[%c0_20, %c2, %c0_21] : memref<10x10x40xf32, #tpu.memory_space<vmem>>, vector<8x8x40xf32>
    %20 = vector.shape_cast %19 : vector<8x8x40xf32> to vector<64x40xf32>
    %c0_22 = arith.constant 0 : index
    %c80 = arith.constant 80 : index
    %21 = vector.load %arg9[%c0_22, %c80] : memref<64x360xf32, #tpu.memory_space<vmem>>, vector<64x40xf32>
    tpu.vector_store %arg9[%c0_22, %c80], %20 {strides = array<i32>} : memref<64x360xf32, #tpu.memory_space<vmem>>, vector<64x40xf32>,
    %c1_23 = arith.constant 1 : index
    %c0_24 = arith.constant 0 : index
    %c0_25 = arith.constant 0 : index
    %22 = vector.load %arg8[%c1_23, %c0_24, %c0_25] : memref<10x10x40xf32, #tpu.memory_space<vmem>>, vector<8x8x40xf32>
    %23 = vector.shape_cast %22 : vector<8x8x40xf32> to vector<64x40xf32>
    %c0_26 = arith.constant 0 : index
    %c120 = arith.constant 120 : index
    %24 = vector.load %arg9[%c0_26, %c120] : memref<64x360xf32, #tpu.memory_space<vmem>>, vector<64x40xf32>
    tpu.vector_store %arg9[%c0_26, %c120], %23 {strides = array<i32>} : memref<64x360xf32, #tpu.memory_space<vmem>>, vector<64x40xf32>,
    %c1_27 = arith.constant 1 : index
    %c1_28 = arith.constant 1 : index
    %c0_29 = arith.constant 0 : index
    %25 = vector.load %arg8[%c1_27, %c1_28, %c0_29] : memref<10x10x40xf32, #tpu.memory_space<vmem>>, vector<8x8x40xf32>
    %26 = vector.shape_cast %25 : vector<8x8x40xf32> to vector<64x40xf32>
    %c0_30 = arith.constant 0 : index
    %c160 = arith.constant 160 : index
    %27 = vector.load %arg9[%c0_30, %c160] : memref<64x360xf32, #tpu.memory_space<vmem>>, vector<64x40xf32>
    tpu.vector_store %arg9[%c0_30, %c160], %26 {strides = array<i32>} : memref<64x360xf32, #tpu.memory_space<vmem>>, vector<64x40xf32>,
    %c1_31 = arith.constant 1 : index
    %c2_32 = arith.constant 2 : index
    %c0_33 = arith.constant 0 : index
    %28 = vector.load %arg8[%c1_31, %c2_32, %c0_33] : memref<10x10x40xf32, #tpu.memory_space<vmem>>, vector<8x8x40xf32>
    %29 = vector.shape_cast %28 : vector<8x8x40xf32> to vector<64x40xf32>
    %c0_34 = arith.constant 0 : index
    %c200 = arith.constant 200 : index
    %30 = vector.load %arg9[%c0_34, %c200] : memref<64x360xf32, #tpu.memory_space<vmem>>, vector<64x40xf32>
    tpu.vector_store %arg9[%c0_34, %c200], %29 {strides = array<i32>} : memref<64x360xf32, #tpu.memory_space<vmem>>, vector<64x40xf32>,
    %c2_35 = arith.constant 2 : index
    %c0_36 = arith.constant 0 : index
    %c0_37 = arith.constant 0 : index
    %31 = vector.load %arg8[%c2_35, %c0_36, %c0_37] : memref<10x10x40xf32, #tpu.memory_space<vmem>>, vector<8x8x40xf32>
    %32 = vector.shape_cast %31 : vector<8x8x40xf32> to vector<64x40xf32>
    %c0_38 = arith.constant 0 : index
    %c240 = arith.constant 240 : index
    %33 = vector.load %arg9[%c0_38, %c240] : memref<64x360xf32, #tpu.memory_space<vmem>>, vector<64x40xf32>
    tpu.vector_store %arg9[%c0_38, %c240], %32 {strides = array<i32>} : memref<64x360xf32, #tpu.memory_space<vmem>>, vector<64x40xf32>,
    %c2_39 = arith.constant 2 : index
    %c1_40 = arith.constant 1 : index
    %c0_41 = arith.constant 0 : index
    %34 = vector.load %arg8[%c2_39, %c1_40, %c0_41] : memref<10x10x40xf32, #tpu.memory_space<vmem>>, vector<8x8x40xf32>
    %35 = vector.shape_cast %34 : vector<8x8x40xf32> to vector<64x40xf32>
    %c0_42 = arith.constant 0 : index
    %c280 = arith.constant 280 : index
    %36 = vector.load %arg9[%c0_42, %c280] : memref<64x360xf32, #tpu.memory_space<vmem>>, vector<64x40xf32>
    tpu.vector_store %arg9[%c0_42, %c280], %35 {strides = array<i32>} : memref<64x360xf32, #tpu.memory_space<vmem>>, vector<64x40xf32>,
    %c2_43 = arith.constant 2 : index
    %c2_44 = arith.constant 2 : index
    %c0_45 = arith.constant 0 : index
    %37 = vector.load %arg8[%c2_43, %c2_44, %c0_45] : memref<10x10x40xf32, #tpu.memory_space<vmem>>, vector<8x8x40xf32>
    %38 = vector.shape_cast %37 : vector<8x8x40xf32> to vector<64x40xf32>
    %c0_46 = arith.constant 0 : index
    %c320 = arith.constant 320 : index
    %39 = vector.load %arg9[%c0_46, %c320] : memref<64x360xf32, #tpu.memory_space<vmem>>, vector<64x40xf32>
    tpu.vector_store %arg9[%c0_46, %c320], %38 {strides = array<i32>} : memref<64x360xf32, #tpu.memory_space<vmem>>, vector<64x40xf32>,
    %c0_47 = arith.constant 0 : index
    %c0_48 = arith.constant 0 : index
    %40 = vector.load %arg9[%c0_47, %c0_48] : memref<64x360xf32, #tpu.memory_space<vmem>>, vector<64x360xf32>
    %c0_49 = arith.constant 0 : index
    %c0_50 = arith.constant 0 : index
    %41 = vector.load %arg4[%c0_49, %c0_50] : memref<360x64xf32, #tpu.memory_space<vmem>>, vector<360x64xf32>
    %cst_51 = arith.constant dense<0.000000e+00> : vector<64x64xf32>
    %42 = tpu.matmul %40, %41, %cst_51 {dimension_numbers = #tpu.dot_dimension_numbers<[1], [0], [0], [1], [0, 0, 1, 1], [], []>} : vector<64x360xf32>, vector<360x64xf32>, vector<64x64xf32> -> vector<64x64xf32>
    %cst_52 = arith.constant 0.000000e+00 : f32
    %43 = vector.broadcast %cst_52 : f32 to vector<64x64xf32>
    %44 = arith.cmpf ogt, %42, %43 : vector<64x64xf32>
    %cst_53 = arith.constant 0.000000e+00 : f32
    %45 = vector.broadcast %cst_53 : f32 to vector<64x64xf32>
    %46 = arith.minimumf %42, %45 : vector<64x64xf32>
    %47 = math.exp %46 : vector<64x64xf32>
    %cst_54 = arith.constant 1.000000e+00 : f32
    %48 = vector.broadcast %cst_54 : f32 to vector<64x64xf32>
    %49 = arith.subf %47, %48 : vector<64x64xf32>
    %50 = arith.select %44, %42, %49 : vector<64x64xi1>, vector<64x64xf32>
    %51 = vector.shape_cast %50 : vector<64x64xf32> to vector<1x8x8x64xf32>
    %c0_55 = arith.constant 0 : index
    %c0_56 = arith.constant 0 : index
    %c0_57 = arith.constant 0 : index
    %c0_58 = arith.constant 0 : index
    %52 = vector.load %arg5[%c0_55, %c0_56, %c0_57, %c0_58] : memref<1x8x8x64xf32, #tpu.memory_space<vmem>>, vector<1x8x8x64xf32>
    tpu.vector_store %arg5[%c0_55, %c0_56, %c0_57, %c0_58], %51 {strides = array<i32>} : memref<1x8x8x64xf32, #tpu.memory_space<vmem>>, vector<1x8x8x64xf32>,
    %cst_59 = arith.constant dense<0.000000e+00> : vector<64xf32>
    %53 = vector.multi_reduction <add>, %50, %cst_59 [0] : vector<64x64xf32> to vector<64xf32>
    %54 = vector.shape_cast %53 : vector<64xf32> to vector<1x1x64xf32>
    %c0_60 = arith.constant 0 : index
    %c0_61 = arith.constant 0 : index
    %c0_62 = arith.constant 0 : index
    %55 = vector.load %arg6[%c0_60, %c0_61, %c0_62] : memref<1x1x64xf32, #tpu.memory_space<vmem>>, vector<1x1x64xf32>
    tpu.vector_store %arg6[%c0_60, %c0_61, %c0_62], %54 {strides = array<i32>} : memref<1x1x64xf32, #tpu.memory_space<vmem>>, vector<1x1x64xf32>,
    %56 = arith.mulf %50, %50 : vector<64x64xf32>
    %cst_63 = arith.constant dense<0.000000e+00> : vector<64xf32>
    %57 = vector.multi_reduction <add>, %56, %cst_63 [0] : vector<64x64xf32> to vector<64xf32>
    %58 = vector.shape_cast %57 : vector<64xf32> to vector<1x1x64xf32>
    %c0_64 = arith.constant 0 : index
    %c0_65 = arith.constant 0 : index
    %c0_66 = arith.constant 0 : index
    %59 = vector.load %arg7[%c0_64, %c0_65, %c0_66] : memref<1x1x64xf32, #tpu.memory_space<vmem>>, vector<1x1x64xf32>
    tpu.vector_store %arg7[%c0_64, %c0_65, %c0_66], %58 {strides = array<i32>} : memref<1x1x64xf32, #tpu.memory_space<vmem>>, vector<1x1x64xf32>,
    return
  }
  func.func @transform_0(%arg0: i32) -> (i32, i32, i32, i32) {
    %c0_i32 = arith.constant 0 : i32
    %c0_i32_0 = arith.constant 0 : i32
    %c0_i32_1 = arith.constant 0 : i32
    %c0_i32_2 = arith.constant 0 : i32
    return %arg0, %c0_i32, %c0_i32_0, %c0_i32_1 : i32, i32, i32, i32
  }
  func.func @transform_1(%arg0: i32) -> (i32, i32) {
    %c0_i32 = arith.constant 0 : i32
    %c0_i32_0 = arith.constant 0 : i32
    %c0_i32_1 = arith.constant 0 : i32
    return %c0_i32, %c0_i32_0 : i32, i32
  }
  func.func @transform_2(%arg0: i32) -> (i32, i32) {
    %c0_i32 = arith.constant 0 : i32
    %c0_i32_0 = arith.constant 0 : i32
    %c0_i32_1 = arith.constant 0 : i32
    return %c0_i32, %c0_i32_0 : i32, i32
  }
  func.func @transform_3(%arg0: i32) -> (i32, i32) {
    %c0_i32 = arith.constant 0 : i32
    %c0_i32_0 = arith.constant 0 : i32
    %c0_i32_1 = arith.constant 0 : i32
    return %c0_i32, %c0_i32_0 : i32, i32
  }
  func.func @transform_4(%arg0: i32) -> (i32, i32, i32, i32) {
    %c0_i32 = arith.constant 0 : i32
    %c0_i32_0 = arith.constant 0 : i32
    %c0_i32_1 = arith.constant 0 : i32
    %c0_i32_2 = arith.constant 0 : i32
    return %arg0, %c0_i32, %c0_i32_0, %c0_i32_1 : i32, i32, i32, i32
  }
  func.func @transform_5(%arg0: i32) -> (i32, i32, i32) {
    %c0_i32 = arith.constant 0 : i32
    %c0_i32_0 = arith.constant 0 : i32
    %c0_i32_1 = arith.constant 0 : i32
    return %arg0, %c0_i32, %c0_i32_0 : i32, i32, i32
  }
  func.func @transform_6(%arg0: i32) -> (i32, i32, i32) {
    %c0_i32 = arith.constant 0 : i32
    %c0_i32_0 = arith.constant 0 : i32
    %c0_i32_1 = arith.constant 0 : i32
    return %arg0, %c0_i32, %c0_i32_0 : i32, i32, i32
  }
}

</mosaic_0001>

<bundles_post_ra>
// kernel: tpu_custom_call.1
= control target key start
LH: loop header
LB: loop body
LE: loop exit
PB: predicated region body
PF: predicated region fallthrough
CT: control target
= control target key end

     0   :  { %12 = vsyncpa [#allocation5], 0  ;;  %s2271_s0 = inlined_call_operand.vmem [shape: f32[2,8,8,32], index: 0, kind: input, shape index: {}]   ;;  %s2272_s1 = inlined_call_operand.vmem [shape: f32[1,32], index: 1, kind: input, shape index: {}]   ;;  %s2273_s2 = inlined_call_operand.vmem [shape: f32[1,32], index: 2, kind: input, shape index: {}]   ;;  %s2274_s3 = inlined_call_operand.vmem [shape: f32[360,64], index: 3, kind: input, shape index: {}]   ;;  %s2275_s4 = inlined_call_operand.hbm [shape: f32[2,8,8,64], index: 4, kind: output, shape index: {0}]   ;;  %s2276_s5 = inlined_call_operand.hbm [shape: f32[2,1,64], index: 5, kind: output, shape index: {1}]   ;;  %s2277_s6 = inlined_call_operand.hbm [shape: f32[2,1,64], index: 6, kind: output, shape index: {2}]  }
   0x1   :  { %14 = vsyncpa [#allocation5 + $0x1], 0 }
   0x2   :  { %15 = vsyncpa [#allocation7], 0 }
   0x3   :  { %17 = vsyncpa [#allocation7 + $0x1], 0  ;;  %s1593_s21 = smov 0   ;;  %s1595_s22 = smov 0  }
   0x4   :  { %s1597_s23 = smov 0   ;;  %s1599_s24 = smov 0  }
   0x5 LB: > { %s1614_s25 = sadd.s32 4294967295, %s1544_s24   ;;  %s2278_s26 = sadd.s32 4294967294, %s1544_s24   ;;  %s1544_s24 = sphi %s1599_s24, %s2294_s24   ;;  %s1540_s23 = sphi %s1597_s23, %s2293_s23   ;;  %s1536_s22 = sphi %s1595_s22, %s2292_s22   ;;  %s1532_s21 = sphi %s1593_s21, %s2291_s21  }
   0x6   : > { %s1618_s27 = sadd.s32 1, %s1544_s24   ;;  %s119_s28 = sadd.s32 1, %s1540_s23 }
   0x7   : > { %s116_s29 = ssub.s32 %s1544_s24, %s1618_s27  ;;  %p129_p0 = scmp.ne.s32.totalorder %s1540_s23, %s1536_s22 }
   0x8   : > { %p117_p1 = scmp.eq.s32.totalorder %s116_s29, 0  ;;  %p130_p2 = scmp.eq.s32.totalorder %s1614_s25, 1 }
   0x9   : > { %p135_p3 = scmp.ne.s32.totalorder %s1536_s22, %s1532_s21  ;;  %p136_p4 = scmp.eq.s32.totalorder %s2278_s26, 1 }
   0xa   : > { %s1631_s30 = scalar_select %p117_p1, %s1540_s23, %s119_s28  }
   0xb   : > { %p1633_p5 = por %p130_p2, %p129_p0  ;;  %p1637_p6 = por %p136_p4, %p135_p3 }
   0xc   : > { %p1284_p7 = scmp.ge.s32.totalorder %s1544_s24, 1  ;;  %p223_p8 = scmp.lt.s32.totalorder %s1544_s24, 3 }
   0xe   : > { %p224_p9 = pnand %p1284_p7, %p223_p8 }
   0xf   : > { %p261_p10 = scmp.lt.s32.totalorder (!%p224_p9), %s1614_s25, 1  ;;  %s1547_s18 = smov (!%p224_p9), 4  }
  0x10   : > { %227 = sbr.rel (%p224_p9) target bundleno = 621 (0x26d), region = 36  ;;  %s1548_s19 = smov (!%p224_p9), 80  }
  0x11   : > { %s1549_s20 = smov (!%p224_p9), 40   ;;  %s2279_s28 = smov (!%p224_p9), 24  }
  0x12   : > { %s1551_s29 = smov (!%p224_p9), 112   ;;  %s1553_s10 = smov (!%p224_p9), 120  }
  0x13   : > { %s1554_s11 = smov (!%p224_p9), 32   ;;  %s2287_s17 = smov (!%p224_p9), 64  }
  0x14   : > { %s2289_s26 = smov (!%p224_p9), 72  }
  0x15   : > { %vm266_vm0 = vcmask 326656   ;;  %s262_s9 = scalar_select %p261_p10, %s1614_s25, 1  ;;  %vm268_vm1 = vcmask 320512   ;;  %v1546_v0 = vmov 0.0   ;;  %v1404_v1 = vld [vmem:[%s2272_s1] ss:$0 sm:$0xff] }
  0x16   : > { %272 = vst.msk [vmem:[#allocation2 + $0x20] sm:$0xff] %vm266_vm0, %v1546_v0  ;;  %v1405_v2 = vld [vmem:[%s2273_s2] ss:$0 sm:$0xff]  ;;  %vm353_vm2 = vcmask 293920   ;;  %vm418_vm3 = vcmask 654656   ;;  %v828_v56 = vld [vmem:[%s2274_s3 + $0x78] sm:$0xff] }
  0x17   : > { %273 = vst.msk [vmem:[#allocation2 + $0x28] sm:$0x3] %vm268_vm1, %v1546_v0  ;;  %s1309_s12 = sshll.u32 %s262_s9, 6  ;;  %s2283_s9 = smov 64   ;;  %v827_v57 = vld [vmem:[%s2274_s3 + $0x70] sm:$0xff]  ;;  %883 = vmatpush.msra.mxu0 %v828_v56  ;;  %1311 = vmatpush.msra.mxu3 %v828_v56  ;;  %v826_v58 = vld [vmem:[%s2274_s3 + $0x68] sm:$0xff] }
  0x18   : > { %267 = vst.msk [vmem:[#allocation2] sm:$0xff] %vm266_vm0, %v1546_v0  ;;  %s1654_s15 = scalar_lea.vmem %s2271_s0, %s1309_s12  ;;  %s2281_s12 = smov 72   ;;  %v825_v60 = vld [vmem:[%s2274_s3 + $0x60] sm:$0xff]  ;;  %vm467_vm4 = vcmask 982656   ;;  %v824_v63 = vld [vmem:[%s2274_s3 + $0x58] sm:$0xff]  ;;  %vm675_vm5 = vcmask 195584  }
  0x19   : > { %269 = vst.msk [vmem:[#allocation2 + $0x8] sm:$0x3] %vm268_vm1, %v1546_v0  ;;  %v289_v3 = vld [vmem:[%s1654_s15 + $0x8] sm:$0xff]  ;;  %v288_v4 = vld [vmem:[%s1654_s15] sm:$0xff]  ;;  %v290_v8 = vld [vmem:[%s1654_s15 + $0x10] sm:$0xff]  ;;  %884 = vmatpush.msra.mxu0 %v827_v57  ;;  %1312 = vmatpush.msra.mxu3 %v827_v57  ;;  %vm518_vm6 = vcmask 261120  }
  0x1a   : > { %270 = vst.msk [vmem:[#allocation2 + $0x10] sm:$0xff] %vm266_vm0, %v1546_v0  ;;  %v301_v5 = vmul.f32 %v1404_v1, %v289_v3  ;;  %v300_v6 = vmul.f32 %v1404_v1, %v288_v4  ;;  %v292_v7 = vld [vmem:[%s1654_s15 + $0x20] sm:$0xff]  ;;  %v291_v9 = vld [vmem:[%s1654_s15 + $0x18] sm:$0xff]  ;;  %v293_v13 = vld [vmem:[%s1654_s15 + $0x28] sm:$0xff]  ;;  %v302_v15 = vmul.f32 %v1404_v1, %v290_v8  ;;  %vm731_vm7 = vcmask 523456  }
  0x1b   : > { %271 = vst.msk [vmem:[#allocation2 + $0x18] sm:$0x3] %vm268_vm1, %v1546_v0  ;;  %v304_v10 = vmul.f32 %v1404_v1, %v292_v7  ;;  %v303_v16 = vmul.f32 %v1404_v1, %v291_v9  ;;  %v305_v17 = vmul.f32 %v1404_v1, %v293_v13  ;;  %v294_v21 = vld [vmem:[%s1654_s15 + $0x30] sm:$0xff]  ;;  %v295_v24 = vld [vmem:[%s1654_s15 + $0x38] sm:$0xff]  ;;  %885 = vmatpush.msra.mxu0 %v826_v58  ;;  %v857_v61 = vld [vmem:[%s2274_s3 + $0x160] sm:$0xff]  ;;  %vm516_vm8 = vcmask 1048512  }
  0x1c   : > { %274 = vst.msk [vmem:[#allocation2 + $0x30] sm:$0xff] %vm266_vm0, %v1546_v0  ;;  %v313_v11 = vadd.f32 %v1405_v2, %v301_v5  ;;  %v312_v12 = vadd.f32 %v1405_v2, %v300_v6  ;;  %v314_v18 = vadd.f32 %v1405_v2, %v302_v15  ;;  %v306_v22 = vmul.f32 %v1404_v1, %v294_v21  ;;  %v822_v3 = vld [vmem:[%s2274_s3 + $0x48] sm:$0xff]  ;;  %v821_v6 = vld [vmem:[%s2274_s3 + $0x40] sm:$0xff]  ;;  %v820_v8 = vld [vmem:[%s2274_s3 + $0x38] sm:$0xff]  ;;  %s1442_s15 = scalar_lea.hbm %s2275_s4, 128 }
  0x1d   : > { %275 = vst.msk [vmem:[#allocation2 + $0x38] sm:$0x3] %vm268_vm1, %v1546_v0  ;;  %v316_v14 = vadd.f32 %v1405_v2, %v304_v10  ;;  %v315_v19 = vadd.f32 %v1405_v2, %v303_v16  ;;  %v317_v20 = vadd.f32 %v1405_v2, %v305_v17  ;;  %v307_v25 = vmul.f32 %v1404_v1, %v295_v24  ;;  %v855_v1 = vld [vmem:[%s2274_s3 + $0x150] sm:$0xff]  ;;  %v854_v4 = vld [vmem:[%s2274_s3 + $0x148] sm:$0xff]  ;;  %v853_v7 = vld [vmem:[%s2274_s3 + $0x140] sm:$0xff] }
  0x1e   : > { %276 = vst.msk [vmem:[#allocation2 + $0x40] sm:$0xff] %vm266_vm0, %v1546_v0  ;;  %330 = vrot.lane.b32.xlu0 %v313_v11, %s1547_s18  ;;  %328 = vrot.lane.b32.xlu1 %v312_v12, %s1547_s18  ;;  %v318_v23 = vadd.f32 %v1405_v2, %v306_v22  ;;  %v852_v9 = vld [vmem:[%s2274_s3 + $0x138] sm:$0xff]  ;;  %v819_v11 = vld [vmem:[%s2274_s3 + $0x30] sm:$0xff]  ;;  %vm780_vm9 = vcmask 851456   ;;  %vm574_vm10 = vcmask 589056   ;;  %vm858_vm11 = vcmask 850944  }
  0x1f   : > { %277 = vst.msk [vmem:[#allocation2 + $0x48] sm:$0x3] %vm268_vm1, %v1546_v0  ;;  %336 = vrot.lane.b32.xlu2 %v316_v14, %s1547_s18  ;;  %v319_v26 = vadd.f32 %v1405_v2, %v307_v25  ;;  %v362_v54 = vld [vmem:[#allocation2] sm:$0xff]  ;;  %968 = vmatpush.msra.mxu2 %v857_v61  ;;  %v823_v2 = vld [vmem:[%s2274_s3 + $0x50] sm:$0xff]  ;;  %v1837_v10 = vld [vmem:[%s2274_s3 + $0xf8] sm:$0xff]  ;;  %vm623_vm12 = vcmask 917056  }
  0x20   : > { %278 = vst.msk [vmem:[#allocation2 + $0x50] sm:$0xff] %vm266_vm0, %v1546_v0  ;;  %v427_v27 = vld [vmem:[#allocation2 + $0x2] sm:$0xff]  ;;  %1313 = vmatpush.msra.mxu3 %v826_v58  ;;  %886 = vmatpush.msra.mxu0 %v825_v60  ;;  %v1846_v12 = vld [vmem:[%s2274_s3 + $0xf0] sm:$0xff]  ;;  %v848_v21 = vld [vmem:[%s2274_s3 + $0x118] sm:$0xff]  ;;  %vm673_vm13 = vcmask 1048448   ;;  %vm1054_vm14 = vcmask 523264  }
  0x21   : > { %279 = vst.msk [vmem:[#allocation2 + $0x58] sm:$0x3] %vm268_vm1, %v1546_v0  ;;  %v378_v28 = vld [vmem:[#allocation2 + $0x1] sm:$0xff]  ;;  %924 = vmatpush.msra.mxu1 %v1837_v10  ;;  %v851_v13 = vld [vmem:[%s2274_s3 + $0x130] sm:$0xff]  ;;  %v1891_v22 = vld [vmem:[%s2274_s3 + $0xd8] sm:$0xff] }
  0x22   : > { %280 = vst.msk [vmem:[#allocation2 + $0x60] sm:$0xff] %vm266_vm0, %v1546_v0  ;;  %1314 = vmatpush.msra.mxu3 %v825_v60  ;;  %887 = vmatpush.msra.mxu0 %v824_v63  ;;  %v818_v14 = vld [vmem:[%s2274_s3 + $0x28] sm:$0xff]  ;;  %v817_v17 = vld [vmem:[%s2274_s3 + $0x20] sm:$0xff]  ;;  %v847_v24 = vld [vmem:[%s2274_s3 + $0x110] sm:$0xff] }
  0x23   : > { %281 = vst.msk [vmem:[#allocation2 + $0x68] sm:$0x3] %vm268_vm1, %v1546_v0  ;;  %925 = vmatpush.msra.mxu1 %v1846_v12  ;;  %v850_v15 = vld [vmem:[%s2274_s3 + $0x128] sm:$0xff]  ;;  %v1906_v25 = vld [vmem:[%s2274_s3 + $0xd0] sm:$0xff] }
  0x24   : > { %282 = vst.msk [vmem:[#allocation2 + $0x70] sm:$0xff] %vm266_vm0, %v1546_v0  ;;  %1315 = vmatpush.msra.mxu3 %v824_v63  ;;  %888 = vmatpush.msra.mxu0 %v823_v2  ;;  %v1867_v16 = vld [vmem:[%s2274_s3 + $0xe8] sm:$0xff] }
  0x25   : > { %283 = vst.msk [vmem:[#allocation2 + $0x78] sm:$0x3] %vm268_vm1, %v1546_v0  ;;  %926 = vmatpush.msra.mxu1 %v1867_v16 }
  0x26   : > { %284 = vst.msk [vmem:[#allocation2 + $0x80] sm:$0xff] %vm266_vm0, %v1546_v0  ;;  %332 = vrot.lane.b32.xlu0 %v314_v18, %s1547_s18  ;;  %334 = vrot.lane.b32.xlu1 %v315_v19, %s1547_s18  ;;  %v849_v18 = vld [vmem:[%s2274_s3 + $0x120] sm:$0xff] }
  0x27   : > { %285 = vst.msk [vmem:[#allocation2 + $0x88] sm:$0x3] %vm268_vm1, %v1546_v0  ;;  %338 = vrot.lane.b32.xlu2 %v317_v20, %s1547_s18  ;;  %889 = vmatpush.msra.mxu0 %v822_v3  ;;  %v1879_v19 = vld [vmem:[%s2274_s3 + $0xe0] sm:$0xff]  ;;  %v816_v20 = vld [vmem:[%s2274_s3 + $0x18] sm:$0xff] }
  0x28   : > { %286 = vst.msk [vmem:[#allocation2 + $0x90] sm:$0xff] %vm266_vm0, %v1546_v0  ;;  %1316 = vmatpush.msra.mxu3 %v823_v2  ;;  %927 = vmatpush.msra.mxu1 %v1879_v19 }
  0x29   : > { %287 = vst.msk [vmem:[#allocation2 + $0x98] sm:$0x3] %vm268_vm1, %v1546_v0  ;;  %v856_v0 = vld [vmem:[%s2274_s3 + $0x158] sm:$0xff]  ;;  %890 = vmatpush.msra.mxu0 %v821_v6 }
  0x2a   : > { %370 = vst.msk [vmem:[#allocation3] sm:$0xff] %vm266_vm0, %v362_v54  ;;  %969 = vmatpush.msra.mxu2 %v856_v0  ;;  %1317 = vmatpush.msra.mxu3 %v822_v3 }
  0x2b   : > { %891 = vmatpush.msra.mxu0 %v820_v8  ;;  %928 = vmatpush.msra.mxu1 %v1891_v22 }
  0x2c   : > { %970 = vmatpush.msra.mxu2 %v855_v1  ;;  %1318 = vmatpush.msra.mxu3 %v821_v6 }
  0x2d   : > { %892 = vmatpush.msra.mxu0 %v819_v11  ;;  %929 = vmatpush.msra.mxu1 %v1906_v25 }
  0x2e   : > { %340 = vrot.lane.b32.xlu0 %v318_v23, %s1547_s18  ;;  %443 = vrot.lane.b32.xlu1 %v427_v27, %s1548_s19  ;;  %v815_v23 = vld [vmem:[%s2274_s3 + $0x10] sm:$0xff]  ;;  %v846_v27 = vld [vmem:[%s2274_s3 + $0x108] sm:$0xff] }
  0x2f   : > { %342 = vrot.lane.b32.xlu2 %v319_v26, %s1547_s18  ;;  %971 = vmatpush.msra.mxu2 %v854_v4  ;;  %v814_v26 = vld [vmem:[%s2274_s3 + $0x8] sm:$0xff] }
  0x30   : > { %893 = vmatpush.msra.mxu0 %v818_v14  ;;  %1319 = vmatpush.msra.mxu3 %v820_v8  ;;  %v698_v4 = vld [vmem:[#allocation2 + $0x91] sm:$0xff] }
  0x31   : > { %972 = vmatpush.msra.mxu2 %v853_v7 }
  0x32   : > { %894 = vmatpush.msra.mxu0 %v817_v17  ;;  %1320 = vmatpush.msra.mxu3 %v819_v11 }
  0x33   : > { %973 = vmatpush.msra.mxu2 %v852_v9  ;;  %v747_v9 = vld [vmem:[#allocation2 + $0x92] sm:$0xff] }
  0x34   : > { %895 = vmatpush.msra.mxu0 %v816_v20  ;;  %1321 = vmatpush.msra.mxu3 %v818_v14 }
  0x35   : > { %974 = vmatpush.msra.mxu2 %v851_v13 }
  0x36   : > { %896 = vmatpush.msra.mxu0 %v815_v23  ;;  %1322 = vmatpush.msra.mxu3 %v817_v17 }
  0x37   : > { %394 = vrot.lane.b32.xlu2 %v378_v28, %s1549_s20  ;;  %975 = vmatpush.msra.mxu2 %v850_v15 }
  0x38   : > { %897 = vmatpush.msra.mxu0 %v814_v26  ;;  %1323 = vmatpush.msra.mxu3 %v816_v20 }
  0x39   : > { %976 = vmatpush.msra.mxu2 %v849_v18 }
  0x3a   : > { %1324 = vmatpush.msra.mxu3 %v815_v23 }
  0x3b   : > { %977 = vmatpush.msra.mxu2 %v848_v21 }
  0x3c   : > { %1325 = vmatpush.msra.mxu3 %v814_v26 }
  0x3d   : > { %978 = vmatpush.msra.mxu2 %v847_v24 }
  0x3f   : > { %979 = vmatpush.msra.mxu2 %v846_v27 }
  0x79   : > { %v337_v31 = vpop.permute.xlu2 %336 }
  0x7a   : > { %358 = vst.msk [vmem:[#allocation2 + $0x51] sm:$0xff] %vm353_vm2, %v337_v31  ;;  %v845_v31 = vld [vmem:[%s2274_s3 + $0x100] sm:$0xff] }
  0x7b   : > { %980 = vmatpush.msra.mxu2 %v845_v31 }
  0x81   : > { %v1710_v40 = vld [vmem:[#allocation2 + $0x50] sm:$0xff]  ;;  %v339_v44 = vpop.permute.xlu2 %338 }
  0x82   : > { %375 = vst.msk [vmem:[#allocation3 + $0x78] sm:$0xff] %vm266_vm0, %v1710_v40  ;;  %v1747_v50 = vld [vmem:[#allocation2 + $0x51] sm:$0xff] }
  0x83   : > { %359 = vst.msk [vmem:[#allocation2 + $0x61] sm:$0xff] %vm353_vm2, %v339_v44  ;;  %v1754_v52 = vld [vmem:[#allocation2 + $0x52] sm:$0xff]  ;;  %v1994_v44 = vld [vmem:[%s2274_s3 + $0x88] sm:$0xff] }
  0x89   : > { %v343_v51 = vpop.permute.xlu2 %342 }
  0x8a   : > { %v1728_v46 = vld [vmem:[#allocation2 + $0x60] sm:$0xff]  ;;  %361 = vst.msk [vmem:[#allocation2 + $0x81] sm:$0xff] %vm353_vm2, %v343_v51 }
  0x8b   : > { %376 = vst.msk [vmem:[#allocation3 + $0x90] sm:$0xff] %vm266_vm0, %v1728_v46  ;;  %v1782_v59 = vld [vmem:[#allocation2 + $0x61] sm:$0xff] }
  0x8c   : > { %v1818_v5 = vld [vmem:[#allocation2 + $0x62] sm:$0xff] }
  0x90   : > { %v331_v29 = vpop.permute.xlu0 %330  ;;  %v329_v30 = vpop.permute.xlu1 %328 }
  0x91   : > { %355 = vst.msk [vmem:[#allocation2 + $0x21] sm:$0xff] %vm353_vm2, %v331_v29  ;;  %v395_v55 = vpop.permute.xlu2 %394  ;;  %v1922_v29 = vld [vmem:[%s2274_s3 + $0xc8] sm:$0xff]  ;;  %v483_v51 = vld [vmem:[#allocation2 + $0x80] sm:$0xff] }
  0x92   : > { %354 = vst.msk [vmem:[#allocation2 + $0x11] sm:$0xff] %vm353_vm2, %v329_v30  ;;  %v813_v30 = vld [vmem:[%s2274_s3] sm:$0xff]  ;;  %930 = vmatpush.msra.mxu1 %v1922_v29 }
  0x93   : > { %419 = vst.msk [vmem:[#allocation3] sm:$0xff] %vm418_vm3, %v395_v55  ;;  %898 = vmatpush.msra.mxu0 %v813_v30  ;;  %1326 = vmatpush.msra.mxu3 %v813_v30  ;;  %v697_v56 = vld [vmem:[#allocation2 + $0x81] sm:$0xff] }
  0x95   : > { %1327 = vmatpush.msrb.mxu3 %v1837_v10 }
  0x97   : > { %1328 = vmatpush.msrb.mxu3 %v1846_v12 }
  0x98   : > { %v333_v32 = vpop.permute.xlu0 %332  ;;  %v1697_v33 = vld [vmem:[#allocation2 + $0x21] sm:$0xff]  ;;  %v335_v35 = vpop.permute.xlu1 %334 }
  0x99   : > { %v633_v34 = vld [vmem:[#allocation2 + $0x20] sm:$0xff]  ;;  %356 = vst.msk [vmem:[#allocation2 + $0x31] sm:$0xff] %vm353_vm2, %v333_v32  ;;  %707 = vrot.lane.b32.xlu0 %v1697_v33, %s2279_s28  ;;  %v476_v36 = vld [vmem:[#allocation2 + $0x10] sm:$0xff]  ;;  %1329 = vmatpush.msrb.mxu3 %v1867_v16 }
  0x9a   : > { %649 = vrot.lane.b32.xlu1 %v633_v34, %s1551_s29  ;;  %357 = vst.msk [vmem:[#allocation2 + $0x41] sm:$0xff] %vm353_vm2, %v335_v35  ;;  %v740_v38 = vld [vmem:[#allocation2 + $0x22] sm:$0xff]  ;;  %v534_v43 = vld [vmem:[#allocation2 + $0x11] sm:$0xff] }
  0x9b   : > { %371 = vst.msk [vmem:[#allocation3 + $0x18] sm:$0xff] %vm266_vm0, %v476_v36  ;;  %v583_v45 = vld [vmem:[#allocation2 + $0x12] sm:$0xff]  ;;  %v1937_v32 = vld [vmem:[%s2274_s3 + $0xc0] sm:$0xff]  ;;  %1330 = vmatpush.msrb.mxu3 %v1879_v19 }
  0x9c   : > { %372 = vst.msk [vmem:[#allocation3 + $0x30] sm:$0xff] %vm266_vm0, %v633_v34  ;;  %931 = vmatpush.msra.mxu1 %v1937_v32 }
  0x9d   : > { %1331 = vmatpush.msrb.mxu3 %v1891_v22 }
  0x9f   : > { %1332 = vmatpush.msrb.mxu3 %v1906_v25 }
  0xa0   : > { %v634_v37 = vld [vmem:[#allocation2 + $0x30] sm:$0xff]  ;;  %v341_v49 = vpop.permute.xlu0 %340  ;;  %v444_v62 = vpop.permute.xlu1 %443 }
  0xa1   : > { %651 = vrot.lane.b32.xlu2 %v634_v37, %s1551_s29  ;;  %v635_v39 = vld [vmem:[#allocation2 + $0x40] sm:$0xff]  ;;  %373 = vst.msk [vmem:[#allocation3 + $0x48] sm:$0xff] %vm266_vm0, %v634_v37  ;;  %492 = vrot.lane.b32.xlu0 %v476_v36, %s1553_s10  ;;  %v1715_v41 = vld [vmem:[#allocation2 + $0x31] sm:$0xff] }
  0xa2   : > { %756 = vrot.lane.b32.xlu1 %v740_v38, %s2283_s9  ;;  %374 = vst.msk [vmem:[#allocation3 + $0x60] sm:$0xff] %vm266_vm0, %v635_v39  ;;  %v1717_v42 = vld [vmem:[#allocation2 + $0x32] sm:$0xff]  ;;  %v1732_v47 = vld [vmem:[#allocation2 + $0x42] sm:$0xff]  ;;  %1333 = vmatpush.msrb.mxu3 %v1922_v29 }
  0xa3   : > { %v1738_v48 = vld [vmem:[#allocation2 + $0x41] sm:$0xff]  ;;  %360 = vst.msk [vmem:[#allocation2 + $0x71] sm:$0xff] %vm353_vm2, %v341_v49  ;;  %v1956_v36 = vld [vmem:[%s2274_s3 + $0xb0] sm:$0xff] }
  0xa4   : > { %468 = vst.msk [vmem:[#allocation3] sm:$0xff] %vm467_vm4, %v444_v62  ;;  %v829_v49 = vld [vmem:[%s2274_s3 + $0x80] sm:$0xff]  ;;  %1334 = vmatpush.msrb.mxu3 %v1937_v32 }
  0xa9   : > { %550 = vrot.lane.b32.xlu2 %v534_v43, %s1554_s11  ;;  %758 = vrot.lane.b32.xlu0 %v1717_v42, %s2283_s9 }
  0xaa   : > { %709 = vrot.lane.b32.xlu1 %v1715_v41, %s2279_s28  ;;  %v1760_v53 = vld [vmem:[#allocation2 + $0x70] sm:$0xff] }
  0xab   : > { %377 = vst.msk [vmem:[#allocation3 + $0xa8] sm:$0xff] %vm266_vm0, %v1760_v53  ;;  %v1951_v35 = vld [vmem:[#allocation2 + $0x71] sm:$0xff] }
  0xb1   : > { %494 = vrot.lane.b32.xlu2 %v633_v34, %s1553_s10  ;;  %653 = vrot.lane.b32.xlu0 %v635_v39, %s1551_s29  ;;  %v1944_v34 = vld [vmem:[#allocation2 + $0x72] sm:$0xff] }
  0xb2   : > { %599 = vrot.lane.b32.xlu1 %v583_v45, %s2281_s12 }
  0xb9   : > { %760 = vrot.lane.b32.xlu2 %v1732_v47, %s2283_s9  ;;  %711 = vrot.lane.b32.xlu0 %v1738_v48, %s2279_s28 }
  0xba   : > { %552 = vrot.lane.b32.xlu1 %v1697_v33, %s1554_s11 }
  0xc1   : > { %655 = vrot.lane.b32.xlu2 %v1710_v40, %s1551_s29  ;;  %601 = vrot.lane.b32.xlu0 %v740_v38, %s2281_s12 }
  0xc2   : > { %396 = vrot.lane.b32.xlu1 %v534_v43, %s1549_s20 }
  0xc9   : > { %713 = vrot.lane.b32.xlu2 %v1747_v50, %s2279_s28  ;;  %445 = vrot.lane.b32.xlu0 %v583_v45, %s1548_s19 }
  0xca   : > { %496 = vrot.lane.b32.xlu1 %v634_v37, %s1553_s10 }
  0xd1   : > { %603 = vrot.lane.b32.xlu2 %v1717_v42, %s2281_s12  ;;  %554 = vrot.lane.b32.xlu0 %v1715_v41, %s1554_s11 }
  0xd2   : > { %762 = vrot.lane.b32.xlu1 %v1754_v52, %s2283_s9 }
  0xd9   : > { %447 = vrot.lane.b32.xlu2 %v740_v38, %s1548_s19  ;;  %398 = vrot.lane.b32.xlu0 %v1697_v33, %s1549_s20  ;;  %v1942_v33 = vld [vmem:[%s2274_s3 + $0xb8] sm:$0xff]  ;;  %v1964_v38 = vld [vmem:[%s2274_s3 + $0xa8] sm:$0xff] }
  0xda   : > { %657 = vrot.lane.b32.xlu1 %v1728_v46, %s1551_s29  ;;  %932 = vmatpush.msra.mxu1 %v1942_v33 }
  0xdb   : > { %1335 = vmatpush.msrb.mxu3 %v1942_v33 }
  0xdc   : > { %933 = vmatpush.msra.mxu1 %v1956_v36 }
  0xdd   : > { %1336 = vmatpush.msrb.mxu3 %v1956_v36 }
  0xde   : > { %934 = vmatpush.msra.mxu1 %v1964_v38 }
  0xdf   : > { %1337 = vmatpush.msrb.mxu3 %v1964_v38 }
  0xe1   : > { %556 = vrot.lane.b32.xlu2 %v1738_v48, %s1554_s11  ;;  %498 = vrot.lane.b32.xlu0 %v635_v39, %s1553_s10  ;;  %v833_v39 = vld [vmem:[%s2274_s3 + $0xa0] sm:$0xff] }
  0xe2   : > { %715 = vrot.lane.b32.xlu1 %v1782_v59, %s2279_s28  ;;  %935 = vmatpush.msra.mxu1 %v833_v39 }
  0xe3   : > { %1338 = vmatpush.msrb.mxu3 %v833_v39 }
  0xe9   : > { %406 = vrot.lane.b32.xlu2 %v1782_v59, %s1549_s20  ;;  %764 = vrot.lane.b32.xlu0 %v1818_v5, %s2283_s9 }
  0xea   : > { %605 = vrot.lane.b32.xlu1 %v1732_v47, %s2281_s12  ;;  %s2288_s12 = smov 24  }
  0xf1   : > { %504 = vrot.lane.b32.xlu2 %v1760_v53, %s1553_s10  ;;  %455 = vrot.lane.b32.xlu0 %v1818_v5, %s1548_s19 }
  0xf2   : > { %400 = vrot.lane.b32.xlu1 %v1715_v41, %s1549_s20  ;;  %v1984_v41 = vld [vmem:[%s2274_s3 + $0x90] sm:$0xff] }
  0xf9   : > { %500 = vrot.lane.b32.xlu2 %v1710_v40, %s1553_s10  ;;  %659 = vrot.lane.b32.xlu0 %v1760_v53, %s1551_s29  ;;  %v1974_v40 = vld [vmem:[%s2274_s3 + $0x98] sm:$0xff] }
  0xfa   : > { %449 = vrot.lane.b32.xlu1 %v1717_v42, %s1548_s19  ;;  %936 = vmatpush.msra.mxu1 %v1974_v40 }
  0xfb   : > { %v1917_v28 = vpop.permute.xlu2 %651  ;;  %1339 = vmatpush.msrb.mxu3 %v1974_v40 }
  0xfc   : > { %678 = vst.msk [vmem:[#allocation3 + $0x28] sm:$0xff] %vm675_vm5, %v1917_v28  ;;  %937 = vmatpush.msra.mxu1 %v1984_v41 }
  0xfd   : > { %1340 = vmatpush.msrb.mxu3 %v1984_v41 }
  0xfe   : > { %938 = vmatpush.msra.mxu1 %v1994_v44 }
  0xff   : > { %1341 = vmatpush.msrb.mxu3 %v1994_v44 }
 0x100   : > { %939 = vmatpush.msra.mxu1 %v829_v49 }
 0x101   : > { %766 = vrot.lane.b32.xlu2 %v1944_v34, %s2287_s17  ;;  %717 = vrot.lane.b32.xlu0 %v1951_v35, %s2288_s12 }
 0x102   : > { %558 = vrot.lane.b32.xlu1 %v1747_v50, %s1554_s11  ;;  %1342 = vmatpush.msrb.mxu3 %v829_v49 }
 0x103   : > { %v551_v37 = vpop.permute.xlu2 %550 }
 0x109   : > { %457 = vrot.lane.b32.xlu2 %v1944_v34, %s1548_s19  ;;  %607 = vrot.lane.b32.xlu0 %v1754_v52, %s2289_s26 }
 0x10a   : > { %408 = vrot.lane.b32.xlu1 %v1951_v35, %s1549_s20 }
 0x10b   : > { %v708_v42 = vpop.permute.xlu0 %707  ;;  %v1989_v43 = vpop.permute.xlu2 %494 }
 0x10c   : > { %521 = vst.msk [vmem:[#allocation3 + $0x20] sm:$0xff] %vm518_vm6, %v1989_v43  ;;  %v650_v45 = vpop.permute.xlu1 %649 }
 0x10d   : > { %676 = vst.msk [vmem:[#allocation3 + $0x10] sm:$0xff] %vm675_vm5, %v650_v45 }
 0x10e   : > { %732 = vst.msk [vmem:[#allocation3 + $0x10] sm:$0xff] %vm731_vm7, %v708_v42 }
 0x111   : > { %661 = vrot.lane.b32.xlu2 %v483_v51, %s1551_s29  ;;  %402 = vrot.lane.b32.xlu0 %v1738_v48, %s1549_s20 }
 0x112   : > { %506 = vrot.lane.b32.xlu1 %v483_v51, %s1553_s10 }
 0x113   : > { %v761_v53 = vpop.permute.xlu2 %760  ;;  %v493_v54 = vpop.permute.xlu0 %492 }
 0x114   : > { %v757_v55 = vpop.permute.xlu1 %756  ;;  %517 = vst.msk [vmem:[#allocation3] sm:$0xff] %vm516_vm8, %v493_v54 }
 0x115   : > { %519 = vst.msk [vmem:[#allocation3 + $0x8] sm:$0xff] %vm518_vm6, %v493_v54 }
 0x116   : > { %781 = vst.msk [vmem:[#allocation3 + $0x10] sm:$0xff] %vm780_vm9, %v757_v55 }
 0x117   : > { %575 = vst.msk [vmem:[#allocation3 + $0x8] sm:$0xff] %vm574_vm10, %v551_v37 }
 0x119   : > { %719 = vrot.lane.b32.xlu2 %v697_v56, %s2288_s12  ;;  %451 = vrot.lane.b32.xlu0 %v1732_v47, %s1548_s19  ;;  %v746_v47 = vld [vmem:[#allocation2 + $0x82] sm:$0xff] }
 0x11a   : > { %502 = vrot.lane.b32.xlu1 %v1728_v46, %s1553_s10  ;;  %s1310_s10 = sshll.u32 %s1614_s25, 6 }
 0x11b   : > { %v2026_v48 = vpop.permute.xlu2 %655  ;;  %v759_v57 = vpop.permute.xlu0 %758  ;;  %v789_v60 = vld [vmem:[#allocation3] sm:$0xff] }
 0x11c   : > { %682 = vst.msk [vmem:[#allocation3 + $0x58] sm:$0xff] %vm675_vm5, %v2026_v48  ;;  %v710_v58 = vpop.permute.xlu1 %709  ;;  %899 = vmatmul.f32.vlgmr.msra.gmra.mxu0 %v789_v60 }
 0x11d   : > { %733 = vst.msk [vmem:[#allocation3 + $0x28] sm:$0xff] %vm731_vm7, %v710_v58  ;;  %v791_v46 = vld [vmem:[#allocation3 + $0x10] sm:$0xff] }
 0x11e   : > { %782 = vst.msk [vmem:[#allocation3 + $0x28] sm:$0xff] %vm780_vm9, %v759_v57  ;;  %1288 = vmatmul.msk.f32.vlgmr.msra.gmra.mxu2 %vm858_vm11, %v791_v46 }
 0x121   : > { %609 = vrot.lane.b32.xlu2 %v1818_v5, %s2289_s26  ;;  %560 = vrot.lane.b32.xlu0 %v1782_v59, %s1554_s11  ;;  %v640_v5 = vld [vmem:[#allocation2 + $0x90] sm:$0xff] }
 0x122   : > { %768 = vrot.lane.b32.xlu1 %v746_v47, %s2287_s17 }
 0x123   : > { %v714_v61 = vpop.permute.xlu2 %713  ;;  %v654_v62 = vpop.permute.xlu0 %653 }
 0x124   : > { %735 = vst.msk [vmem:[#allocation3 + $0x58] sm:$0xff] %vm731_vm7, %v714_v61  ;;  %v600_v63 = vpop.permute.xlu1 %599 }
 0x125   : > { %680 = vst.msk [vmem:[#allocation3 + $0x40] sm:$0xff] %vm675_vm5, %v654_v62  ;;  %v794_v0 = vld [vmem:[#allocation3 + $0x28] sm:$0xff] }
 0x126   : > { %624 = vst.msk [vmem:[#allocation3 + $0x8] sm:$0xff] %vm623_vm12, %v600_v63  ;;  %1289 = vmatmul.msk.f32.gmra.mxu2 %vm858_vm11, %v794_v0 }
 0x127   : > { %674 = vst.msk [vmem:[#allocation3 + $0x8] sm:$0xff] %vm673_vm13, %v650_v45 }
 0x129   : > { %404 = vrot.lane.b32.xlu2 %v1747_v50, %s1549_s20  ;;  %564 = vrot.lane.b32.xlu0 %v697_v56, %s1554_s11 }
 0x12a   : > { %613 = vrot.lane.b32.xlu1 %v746_v47, %s2289_s26 }
 0x12b   : > { %v604_v59 = vpop.permute.xlu2 %603  ;;  %v712_v1 = vpop.permute.xlu0 %711 }
 0x12c   : > { %v553_v2 = vpop.permute.xlu1 %552  ;;  %734 = vst.msk [vmem:[#allocation3 + $0x40] sm:$0xff] %vm731_vm7, %v712_v1 }
 0x12d   : > { %783 = vst.msk [vmem:[#allocation3 + $0x40] sm:$0xff] %vm780_vm9, %v761_v53 }
 0x12e   : > { %v790_v3 = vld [vmem:[#allocation3 + $0x8] sm:$0xff]  ;;  %576 = vst.msk [vmem:[#allocation3 + $0x20] sm:$0xff] %vm574_vm10, %v553_v2 }
 0x12f   : > { %940 = vmatmul.f32.vlgmr.msra.gmra.mxu1 %v790_v3 }
 0x131   : > { %721 = vrot.lane.b32.xlu2 %v698_v4, %s2288_s12  ;;  %663 = vrot.lane.b32.xlu0 %v640_v5, %s1551_s29  ;;  %s1136_s12 = scalar_lea.hbm %s2275_s4, %s1310_s10 }
 0x132   : > { %453 = vrot.lane.b32.xlu1 %v1754_v52, %s1548_s19  ;;  %s2141_s19 = sand.u32 1, %s1536_s22   ;;  %s1139_s18 = sshll.u32 %s1136_s12, 4  ;;  %s1140_s18 = int_to_ptr.hbm [resolvable:$true] %s1139_s18 }
 0x133   : > { %v448_v50 = vpop.permute.xlu2 %447  ;;  %v602_v6 = vpop.permute.xlu0 %601  ;;  %s1285_s20 = sshll.u32 %s2141_s19, 6  ;;  %s1117_s9 = scalar_lea.sflag [#allocation5], %s2141_s19 }
 0x134   : > { %v397_v7 = vpop.permute.xlu1 %396  ;;  %625 = vst.msk [vmem:[#allocation3 + $0x20] sm:$0xff] %vm623_vm12, %v602_v6  ;;  %v797_v8 = vld [vmem:[#allocation3 + $0x40] sm:$0xff]  ;;  %s2145_s29 = scalar_lea.vmem [#allocation4], %s1285_s20 }
 0x135   : > { %677 = vst.msk [vmem:[#allocation3 + $0x20] sm:$0xff] %vm673_vm13, %v1917_v28  ;;  %1290 = vmatmul.msk.f32.gmra.mxu2 %vm858_vm11, %v797_v8  ;;  %s1137_s16 = sshll.u32 %s2145_s29, 4  ;;  %s1138_s16 = int_to_ptr.vmem [resolvable:$true] %s1137_s16 }
 0x136   : > { %420 = vst.msk [vmem:[#allocation3 + $0x18] sm:$0xff] %vm418_vm3, %v397_v7 }
 0x139   : > { %611 = vrot.lane.b32.xlu2 %v1944_v34, %s2289_s26  ;;  %562 = vrot.lane.b32.xlu0 %v1951_v35, %s1554_s11  ;;  %s1436_s26 = sshra.s32 %s1140_s18, 4  ;;  %s1437_s26 = int_to_ptr.hbm [resolvable:$true] %s1436_s26 }
 0x13a   : > { %770 = vrot.lane.b32.xlu1 %v747_v9, %s2287_s17  ;;  %s1438_s28 = scalar_lea.hbm %s1437_s26, 64  ;;  %p1443_p0 = scmp.lt.s32.totalorder %s1437_s26, %s2275_s4 }
 0x13b   : > { %v557_v52 = vpop.permute.xlu2 %556  ;;  %v446_v10 = vpop.permute.xlu0 %445  ;;  %p1439_p11 = scmp.ne.s32.totalorder %s1437_s26, %s1438_s28  ;;  %p1444_p1 = scmp.lt.s32.totalorder %s1442_s15, %s1438_s28 }
 0x13c   : > { %v497_v11 = vpop.permute.xlu1 %496  ;;  %469 = vst.msk [vmem:[#allocation3 + $0x18] sm:$0xff] %vm467_vm4, %v446_v10  ;;  %v793_v12 = vld [vmem:[#allocation3 + $0x20] sm:$0xff] }
 0x13d   : > { %520 = vst.msk [vmem:[#allocation3 + $0x18] sm:$0xff] %vm516_vm8, %v1989_v43  ;;  %943 = vmatmul.f32.gmra.mxu1 %v793_v12  ;;  %p1440_p12 = pnand %p1439_p11, %p1633_p5  ;;  %p1445_p2 = por %p1444_p1, %p1443_p0 }
 0x13e   : > { %523 = vst.msk [vmem:[#allocation3 + $0x38] sm:$0xff] %vm518_vm6, %v497_v11 }
 0x13f   : > { %p1441_p13 = pneg %p1440_p12 }
 0x141   : > { %p1446_p3 = pnand %p1445_p2, %p1441_p13 }
 0x143   : > { %v407_v13 = vpop.permute.xlu2 %406  ;;  %v555_v14 = vpop.permute.xlu0 %554 }
 0x144   : > { %425 = vst.msk [vmem:[#allocation3 + $0x90] sm:$0xff] %vm418_vm3, %v407_v13  ;;  %v763_v15 = vpop.permute.xlu1 %762  ;;  %v792_v16 = vld [vmem:[#allocation3 + $0x18] sm:$0xff] }
 0x145   : > { %577 = vst.msk [vmem:[#allocation3 + $0x38] sm:$0xff] %vm574_vm10, %v555_v14  ;;  %902 = vmatmul.f32.gmra.mxu0 %v792_v16 }
 0x146   : > { %626 = vst.msk [vmem:[#allocation3 + $0x38] sm:$0xff] %vm623_vm12, %v604_v59 }
 0x147   : > { %679 = vst.msk [vmem:[#allocation3 + $0x38] sm:$0xff] %vm673_vm13, %v654_v62 }
 0x148   : > { %784 = vst.msk [vmem:[#allocation3 + $0x58] sm:$0xff] %vm780_vm9, %v763_v15 }
 0x14b   : > { %v505_v17 = vpop.permute.xlu2 %504  ;;  %v399_v18 = vpop.permute.xlu0 %398 }
 0x14c   : > { %531 = vst.msk [vmem:[#allocation3 + $0x98] sm:$0xff] %vm518_vm6, %v505_v17  ;;  %v658_v19 = vpop.permute.xlu1 %657 }
 0x14d   : > { %421 = vst.msk [vmem:[#allocation3 + $0x30] sm:$0xff] %vm418_vm3, %v399_v18 }
 0x14e   : > { %470 = vst.msk [vmem:[#allocation3 + $0x30] sm:$0xff] %vm467_vm4, %v448_v50  ;;  %v796_v20 = vld [vmem:[#allocation3 + $0x38] sm:$0xff] }
 0x14f   : > { %522 = vst.msk [vmem:[#allocation3 + $0x30] sm:$0xff] %vm516_vm8, %v497_v11  ;;  %v800_v21 = vld [vmem:[#allocation3 + $0x58] sm:$0xff]  ;;  %946 = vmatmul.f32.gmra.mxu1 %v796_v20 }
 0x150   : > { %684 = vst.msk [vmem:[#allocation3 + $0x70] sm:$0xff] %vm675_vm5, %v658_v19  ;;  %1291 = vmatmul.msk.f32.gmra.mxu2 %vm858_vm11, %v800_v21 }
 0x153   : > { %v2084_v22 = vpop.permute.xlu2 %500  ;;  %v499_v23 = vpop.permute.xlu0 %498 }
 0x154   : > { %527 = vst.msk [vmem:[#allocation3 + $0x68] sm:$0xff] %vm518_vm6, %v2084_v22  ;;  %v716_v24 = vpop.permute.xlu1 %715 }
 0x155   : > { %525 = vst.msk [vmem:[#allocation3 + $0x50] sm:$0xff] %vm518_vm6, %v499_v23 }
 0x156   : > { %578 = vst.msk [vmem:[#allocation3 + $0x50] sm:$0xff] %vm574_vm10, %v557_v52  ;;  %v795_v25 = vld [vmem:[#allocation3 + $0x30] sm:$0xff] }
 0x157   : > { %736 = vst.msk [vmem:[#allocation3 + $0x70] sm:$0xff] %vm731_vm7, %v716_v24  ;;  %905 = vmatmul.f32.gmra.mxu0 %v795_v25 }
 0x15b   : > { %v767_v26 = vpop.permute.xlu2 %766  ;;  %v765_v27 = vpop.permute.xlu0 %764 }
 0x15c   : > { %v606_v28 = vpop.permute.xlu1 %605  ;;  %785 = vst.msk [vmem:[#allocation3 + $0x70] sm:$0xff] %vm780_vm9, %v765_v27 }
 0x15d   : > { %627 = vst.msk [vmem:[#allocation3 + $0x50] sm:$0xff] %vm623_vm12, %v606_v28 }
 0x15e   : > { %681 = vst.msk [vmem:[#allocation3 + $0x50] sm:$0xff] %vm673_vm13, %v2026_v48 }
 0x163   : > { %v458_v29 = vpop.permute.xlu2 %457  ;;  %v456_v30 = vpop.permute.xlu0 %455  ;;  %v803_v32 = vld [vmem:[#allocation3 + $0x70] sm:$0xff] }
 0x164   : > { %v401_v31 = vpop.permute.xlu1 %400  ;;  %474 = vst.msk [vmem:[#allocation3 + $0x90] sm:$0xff] %vm467_vm4, %v456_v30  ;;  %1292 = vmatmul.msk.f32.gmra.mxu2 %vm858_vm11, %v803_v32 }
 0x165   : > { %530 = vst.msk [vmem:[#allocation3 + $0x90] sm:$0xff] %vm516_vm8, %v505_v17  ;;  %v799_v33 = vld [vmem:[#allocation3 + $0x50] sm:$0xff] }
 0x166   : > { %422 = vst.msk [vmem:[#allocation3 + $0x48] sm:$0xff] %vm418_vm3, %v401_v31  ;;  %949 = vmatmul.f32.gmra.mxu1 %v799_v33 }
 0x16b   : > { %v2099_v34 = vpop.permute.xlu2 %661  ;;  %v660_v35 = vpop.permute.xlu0 %659 }
 0x16c   : > { %688 = vst.msk [vmem:[#allocation3 + $0xa0] sm:$0xff] %vm675_vm5, %v2099_v34  ;;  %v450_v36 = vpop.permute.xlu1 %449  ;;  %v807_v37 = vld [vmem:[#allocation3 + $0x90] sm:$0xff] }
 0x16d   : > { %686 = vst.msk [vmem:[#allocation3 + $0x88] sm:$0xff] %vm675_vm5, %v660_v35  ;;  %917 = vmatmul.f32.vlgmr.msra.gmra.mxu3 %v807_v37 }
 0x16e   : > { %471 = vst.msk [vmem:[#allocation3 + $0x48] sm:$0xff] %vm467_vm4, %v450_v36 }
 0x16f   : > { %524 = vst.msk [vmem:[#allocation3 + $0x48] sm:$0xff] %vm516_vm8, %v499_v23 }
 0x173   : > { %v720_v38 = vpop.permute.xlu2 %719  ;;  %v718_v39 = vpop.permute.xlu0 %717 }
 0x174   : > { %738 = vst.msk [vmem:[#allocation3 + $0xa0] sm:$0xff] %vm731_vm7, %v720_v38  ;;  %v559_v40 = vpop.permute.xlu1 %558 }
 0x175   : > { %737 = vst.msk [vmem:[#allocation3 + $0x88] sm:$0xff] %vm731_vm7, %v718_v39 }
 0x176   : > { %786 = vst.msk [vmem:[#allocation3 + $0x88] sm:$0xff] %vm780_vm9, %v767_v26  ;;  %v798_v41 = vld [vmem:[#allocation3 + $0x48] sm:$0xff] }
 0x177   : > { %579 = vst.msk [vmem:[#allocation3 + $0x68] sm:$0xff] %vm574_vm10, %v559_v40  ;;  %908 = vmatmul.f32.gmra.mxu0 %v798_v41 }
 0x17b   : > { %v610_v42 = vpop.permute.xlu2 %609  ;;  %v608_v43 = vpop.permute.xlu0 %607 }
 0x17c   : > { %v409_v44 = vpop.permute.xlu1 %408  ;;  %628 = vst.msk [vmem:[#allocation3 + $0x68] sm:$0xff] %vm623_vm12, %v608_v43 }
 0x17d   : > { %v806_v45 = vld [vmem:[#allocation3 + $0x88] sm:$0xff]  ;;  %683 = vst.msk [vmem:[#allocation3 + $0x68] sm:$0xff] %vm673_vm13, %v658_v19 }
 0x17e   : > { %1293 = vmatmul.msk.f32.gmra.mxu2 %vm858_vm11, %v806_v45  ;;  %426 = vst.msk [vmem:[#allocation3 + $0xa8] sm:$0xff] %vm418_vm3, %v409_v44 }
 0x17f   : > { %475 = vst.msk [vmem:[#allocation3 + $0xa8] sm:$0xff] %vm467_vm4, %v458_v29 }
 0x183   : > { %v405_v49 = vpop.permute.xlu2 %404  ;;  %v403_v51 = vpop.permute.xlu0 %402 }
 0x184   : > { %424 = vst.msk [vmem:[#allocation3 + $0x78] sm:$0xff] %vm418_vm3, %v405_v49  ;;  %v507_v53 = vpop.permute.xlu1 %506  ;;  %v802_v54 = vld [vmem:[#allocation3 + $0x68] sm:$0xff] }
 0x185   : > { %423 = vst.msk [vmem:[#allocation3 + $0x60] sm:$0xff] %vm418_vm3, %v403_v51  ;;  %952 = vmatmul.f32.gmra.mxu1 %v802_v54 }
 0x186   : > { %532 = vst.msk [vmem:[#allocation3 + $0xa8] sm:$0xff] %vm516_vm8, %v507_v53 }
 0x187   : > { %533 = vst.msk [vmem:[#allocation3 + $0xb0] sm:$0xff] %vm518_vm6, %v507_v53 }
 0x18b   : > { %v452_v55 = vpop.permute.xlu0 %451  ;;  %v722_v63 = vpop.permute.xlu2 %721 }
 0x18c   : > { %v503_v56 = vpop.permute.xlu1 %502  ;;  %472 = vst.msk [vmem:[#allocation3 + $0x60] sm:$0xff] %vm467_vm4, %v452_v55 }
 0x18d   : > { %v810_v48 = vld [vmem:[#allocation3 + $0xa8] sm:$0xff]  ;;  %526 = vst.msk [vmem:[#allocation3 + $0x60] sm:$0xff] %vm516_vm8, %v2084_v22 }
 0x18e   : > { %920 = vmatmul.f32.gmra.mxu3 %v810_v48  ;;  %529 = vst.msk [vmem:[#allocation3 + $0x80] sm:$0xff] %vm518_vm6, %v503_v56 }
 0x193   : > { %v561_v57 = vpop.permute.xlu0 %560  ;;  %v612_v5 = vpop.permute.xlu2 %611 }
 0x194   : > { %v769_v58 = vpop.permute.xlu1 %768  ;;  %580 = vst.msk [vmem:[#allocation3 + $0x80] sm:$0xff] %vm574_vm10, %v561_v57  ;;  %v801_v60 = vld [vmem:[#allocation3 + $0x60] sm:$0xff] }
 0x195   : > { %629 = vst.msk [vmem:[#allocation3 + $0x80] sm:$0xff] %vm623_vm12, %v610_v42  ;;  %911 = vmatmul.f32.gmra.mxu0 %v801_v60 }
 0x196   : > { %685 = vst.msk [vmem:[#allocation3 + $0x80] sm:$0xff] %vm673_vm13, %v660_v35 }
 0x197   : > { %787 = vst.msk [vmem:[#allocation3 + $0xa0] sm:$0xff] %vm780_vm9, %v769_v58 }
 0x199   : > { %v900_v1 = vpop.f32.mrf.mxu0 }
 0x19b   : > { %v565_v46 = vpop.permute.xlu0 %564 }
 0x19c   : > { %v614_v47 = vpop.permute.xlu1 %613  ;;  %582 = vst.msk [vmem:[#allocation3 + $0xb0] sm:$0xff] %vm574_vm10, %v565_v46 }
 0x19d   : > { %631 = vst.msk [vmem:[#allocation3 + $0xb0] sm:$0xff] %vm623_vm12, %v614_v47  ;;  %v805_v61 = vld [vmem:[#allocation3 + $0x80] sm:$0xff] }
 0x19e   : > { %v809_v62 = vld [vmem:[#allocation3 + $0xa0] sm:$0xff]  ;;  %955 = vmatmul.f32.gmra.mxu1 %v805_v61 }
 0x19f   : > { %1294 = vmatmul.msk.f32.gmra.mxu2 %vm858_vm11, %v809_v62 }
 0x1a1   : > { %v982_v7 = vpop.f32.mrf.mxu2 }
 0x1a3   : > { %v664_v0 = vpop.permute.xlu0 %663 }
 0x1a4   : > { %v454_v59 = vpop.permute.xlu1 %453  ;;  %689 = vst.msk [vmem:[#allocation3 + $0xb0] sm:$0xff] %vm673_vm13, %v664_v0 }
 0x1a5   : > { %690 = vst.msk [vmem:[#allocation3 + $0xb8] sm:$0xff] %vm675_vm5, %v664_v0 }
 0x1a6   : > { %739 = vst.msk [vmem:[#allocation3 + $0xb8] sm:$0xff] %vm731_vm7, %v722_v63 }
 0x1a7   : > { %473 = vst.msk [vmem:[#allocation3 + $0x78] sm:$0xff] %vm467_vm4, %v454_v59 }
 0x1a8   : > { %528 = vst.msk [vmem:[#allocation3 + $0x78] sm:$0xff] %vm516_vm8, %v503_v56 }
 0x1a9   : > { %v985_v19 = vpop.f32.mrf.mxu2 }
 0x1ab   : > { %v563_v3 = vpop.permute.xlu0 %562  ;;  %v811_v4 = vld [vmem:[#allocation3 + $0xb0] sm:$0xff] }
 0x1ac   : > { %v941_v2 = vpop.f32.mrf.mxu1  ;;  %581 = vst.msk [vmem:[#allocation3 + $0x98] sm:$0xff] %vm574_vm10, %v563_v3  ;;  %v771_v6 = vpop.permute.xlu1 %770  ;;  %961 = vmatmul.f32.vlgmr.msrb.gmra.mxu3 %v811_v4 }
 0x1ad   : > { %v942_v50 = vadd.f32 %v941_v2, %v900_v1  ;;  %630 = vst.msk [vmem:[#allocation3 + $0x98] sm:$0xff] %vm623_vm12, %v612_v5 }
 0x1ae   : > { %687 = vst.msk [vmem:[#allocation3 + $0x98] sm:$0xff] %vm673_vm13, %v2099_v34 }
 0x1af   : > { %v983_v8 = vadd.f32 %v982_v7, %v942_v50  ;;  %788 = vst.msk [vmem:[#allocation3 + $0xb8] sm:$0xff] %vm780_vm9, %v771_v6  ;;  %v804_v9 = vld [vmem:[#allocation3 + $0x78] sm:$0xff] }
 0x1b0   : > { %914 = vmatmul.f32.gmra.mxu0 %v804_v9 }
 0x1b1   : > { %v1014_v52 = vmin.f32 %v983_v8, 0.0  ;;  %vm1006_vm15 = vcmp.gt.f32.partialorder %v983_v8, 0.0 }
 0x1b3   : > { %v1022_v10 = vmul.f32 1.442695, %v1014_v52 }
 0x1b5   : > { %1406 = vpow2.f32 %v1022_v10  ;;  %v808_v11 = vld [vmem:[#allocation3 + $0x98] sm:$0xff] }
 0x1b6   : > { %v812_v12 = vld [vmem:[#allocation3 + $0xb8] sm:$0xff]  ;;  %958 = vmatmul.f32.gmra.mxu1 %v808_v11 }
 0x1b7   : > { %1295 = vmatmul.msk.f32.gmra.mxu2 %vm858_vm11, %v812_v12 }
 0x1b8   : > { %v988_v31 = vpop.f32.mrf.mxu2 }
 0x1ba   : > { %v944_v16 = vpop.f32.mrf.mxu1 }
 0x1bb   : > { %v1407_v13 = vpop.eup %1406 }
 0x1bc   : > { %v1296_v14 = vadd.f32 -1.0, %v1407_v13 }
 0x1be   : > { %v1046_v15 = vsel %vm1006_vm15, %v983_v8, %v1296_v14 }
 0x1bf   : > { %1055 = vst.msk [vmem:[%s2145_s29] sm:$0xff] %vm1054_vm14, %v1046_v15  ;;  %v1086_v25 = vmul.f32 %v1046_v15, %v1046_v15  ;;  %v1063_v30 = vsel %vm1054_vm14, %v1046_v15, 0.0 }
 0x1c1   : > { %v1094_v36 = vsel %vm1054_vm14, %v1086_v25, 0.0 }
 0x1c2   : > { %v903_v17 = vpop.f32.mrf.mxu0 }
 0x1c3   : > { %v945_v18 = vadd.f32 %v944_v16, %v903_v17 }
 0x1c5   : > { %v986_v20 = vadd.f32 %v985_v19, %v945_v18 }
 0x1c7   : > { %v1015_v21 = vmin.f32 %v986_v20, 0.0  ;;  %vm1007_vm0 = vcmp.gt.f32.partialorder %v986_v20, 0.0 }
 0x1c9   : > { %v1024_v22 = vmul.f32 1.442695, %v1015_v21 }
 0x1cb   : > { %1408 = vpow2.f32 %v1024_v22 }
 0x1cc   : > { %v947_v26 = vpop.f32.mrf.mxu1 }
 0x1d1   : > { %v1409_v23 = vpop.eup %1408 }
 0x1d2   : > { %v1297_v24 = vadd.f32 -1.0, %v1409_v23 }
 0x1d3   : > { %v991_v48 = vpop.f32.mrf.mxu2 }
 0x1d4   : > { %v906_v27 = vpop.f32.mrf.mxu0  ;;  %v1047_v28 = vsel %vm1007_vm0, %v986_v20, %v1297_v24 }
 0x1d5   : > { %v948_v29 = vadd.f32 %v947_v26, %v906_v27  ;;  %v1064_v32 = vsel %vm1054_vm14, %v1047_v28, 0.0  ;;  %v1087_v33 = vmul.f32 %v1047_v28, %v1047_v28  ;;  %1056 = vst.msk [vmem:[%s2145_s29 + $0x8] sm:$0xff] %vm1054_vm14, %v1047_v28 }
 0x1d6   : > { %v1065_v34 = vadd.f32 %v1064_v32, %v1063_v30 }
 0x1d7   : > { %v989_v35 = vadd.f32 %v988_v31, %v948_v29  ;;  %v1095_v37 = vsel %vm1054_vm14, %v1087_v33, 0.0 }
 0x1d8   : > { %v1096_v38 = vadd.f32 %v1095_v37, %v1094_v36 }
 0x1d9   : > { %v1016_v39 = vmin.f32 %v989_v35, 0.0  ;;  %vm1008_vm1 = vcmp.gt.f32.partialorder %v989_v35, 0.0 }
 0x1db   : > { %v1026_v40 = vmul.f32 1.442695, %v1016_v39 }
 0x1dd   : > { %1410 = vpow2.f32 %v1026_v40 }
 0x1e3   : > { %v1411_v41 = vpop.eup %1410  ;;  %v950_v54 = vpop.f32.mrf.mxu1 }
 0x1e4   : > { %v1298_v42 = vadd.f32 -1.0, %v1411_v41 }
 0x1e6   : > { %v1048_v43 = vsel %vm1008_vm1, %v989_v35, %v1298_v42 }
 0x1e7   : > { %v1066_v44 = vsel %vm1054_vm14, %v1048_v43, 0.0  ;;  %v1088_v45 = vmul.f32 %v1048_v43, %v1048_v43  ;;  %1057 = vst.msk [vmem:[%s2145_s29 + $0x10] sm:$0xff] %vm1054_vm14, %v1048_v43  ;;  %v994_v59 = vpop.f32.mrf.mxu2 }
 0x1e8   : > { %v2158_v49 = vadd.f32 %v1066_v44, %v1065_v34 }
 0x1e9   : > { %v1097_v51 = vsel %vm1054_vm14, %v1088_v45, 0.0 }
 0x1ea   : > { %v2161_v53 = vadd.f32 %v1097_v51, %v1096_v38 }
 0x1f0   : > { %v918_v6 = vpop.f32.mrf.mxu3 }
 0x1f4   : > { %v909_v55 = vpop.f32.mrf.mxu0 }
 0x1f5   : > { %v951_v56 = vadd.f32 %v950_v54, %v909_v55 }
 0x1f7   : > { %v992_v57 = vadd.f32 %v991_v48, %v951_v56 }
 0x1f9   : > { %v1017_v58 = vmin.f32 %v992_v57, 0.0  ;;  %vm1009_vm2 = vcmp.gt.f32.partialorder %v992_v57, 0.0 }
 0x1fb   : > { %v1028_v60 = vmul.f32 1.442695, %v1017_v58 }
 0x1fd   : > { %1412 = vpow2.f32 %v1028_v60 }
 0x201   : > { %v997_v7 = vpop.f32.mrf.mxu2 }
 0x202   : > { %v953_v62 = vpop.f32.mrf.mxu1 }
 0x203   : > { %v1413_v46 = vpop.eup %1412 }
 0x204   : > { %v1299_v47 = vadd.f32 -1.0, %v1413_v46 }
 0x206   : > { %v1049_v61 = vsel %vm1009_vm2, %v992_v57, %v1299_v47 }
 0x207   : > { %1058 = vst.msk [vmem:[%s2145_s29 + $0x18] sm:$0xff] %vm1054_vm14, %v1049_v61  ;;  %v1089_v25 = vmul.f32 %v1049_v61, %v1049_v61  ;;  %v1068_v28 = vsel %vm1054_vm14, %v1049_v61, 0.0 }
 0x208   : > { %v1069_v36 = vadd.f32 %v1068_v28, %v2158_v49 }
 0x209   : > { %v1099_v32 = vsel %vm1054_vm14, %v1089_v25, 0.0 }
 0x20a   : > { %v1100_v40 = vadd.f32 %v1099_v32, %v2161_v53 }
 0x211   : > { %v921_v52 = vpop.f32.mrf.mxu3 }
 0x212   : > { %v912_v63 = vpop.f32.mrf.mxu0 }
 0x213   : > { %v954_v0 = vadd.f32 %v953_v62, %v912_v63 }
 0x215   : > { %v995_v1 = vadd.f32 %v994_v59, %v954_v0 }
 0x217   : > { %v1018_v2 = vmin.f32 %v995_v1, 0.0  ;;  %vm1010_vm3 = vcmp.gt.f32.partialorder %v995_v1, 0.0 }
 0x219   : > { %v1030_v3 = vmul.f32 1.442695, %v1018_v2 }
 0x21b   : > { %1414 = vpow2.f32 %v1030_v3  ;;  %v956_v8 = vpop.f32.mrf.mxu1 }
 0x221   : > { %v1415_v4 = vpop.eup %1414 }
 0x222   : > { %v1300_v5 = vadd.f32 -1.0, %v1415_v4  ;;  %v1000_v12 = vpop.f32.mrf.mxu2 }
 0x224   : > { %v1050_v50 = vsel %vm1010_vm3, %v995_v1, %v1300_v5 }
 0x225   : > { %1059 = vst.msk [vmem:[%s2145_s29 + $0x20] sm:$0xff] %vm1054_vm14, %v1050_v50  ;;  %v1090_v29 = vmul.f32 %v1050_v50, %v1050_v50  ;;  %v1070_v33 = vsel %vm1054_vm14, %v1050_v50, 0.0 }
 0x226   : > { %v1071_v41 = vadd.f32 %v1070_v33, %v1069_v36 }
 0x227   : > { %v1101_v37 = vsel %vm1054_vm14, %v1090_v29, 0.0 }
 0x228   : > { %v1102_v44 = vadd.f32 %v1101_v37, %v1100_v40 }
 0x22d   : > { %v915_v9 = vpop.f32.mrf.mxu0 }
 0x22e   : > { %v957_v10 = vadd.f32 %v956_v8, %v915_v9 }
 0x22f   : > { %v962_v17 = vpop.f32.mrf.mxu3 }
 0x230   : > { %v998_v11 = vadd.f32 %v997_v7, %v957_v10  ;;  %v963_v20 = vadd.f32 %v962_v17, %v921_v52 }
 0x232   : > { %v1019_v13 = vmin.f32 %v998_v11, 0.0  ;;  %vm1011_vm4 = vcmp.gt.f32.partialorder %v998_v11, 0.0 }
 0x233   : > { %v959_v14 = vpop.f32.mrf.mxu1 }
 0x234   : > { %v1032_v15 = vmul.f32 1.442695, %v1019_v13  ;;  %v960_v16 = vadd.f32 %v959_v14, %v918_v6 }
 0x236   : > { %1416 = vpow2.f32 %v1032_v15  ;;  %v1001_v18 = vadd.f32 %v1000_v12, %v960_v16 }
 0x238   : > { %v1020_v19 = vmin.f32 %v1001_v18, 0.0  ;;  %vm1012_vm5 = vcmp.gt.f32.partialorder %v1001_v18, 0.0 }
 0x23a   : > { %v1034_v21 = vmul.f32 1.442695, %v1020_v19  ;;  %v1003_v22 = vpop.f32.mrf.mxu2 }
 0x23b   : > { %v1004_v23 = vadd.f32 %v1003_v22, %v963_v20 }
 0x23c   : > { %v1417_v24 = vpop.eup %1416  ;;  %1418 = vpow2.f32 %v1034_v21 }
 0x23d   : > { %v1301_v26 = vadd.f32 -1.0, %v1417_v24  ;;  %v1021_v27 = vmin.f32 %v1004_v23, 0.0  ;;  %vm1013_vm6 = vcmp.gt.f32.partialorder %v1004_v23, 0.0 }
 0x23f   : > { %v1051_v30 = vsel %vm1011_vm4, %v998_v11, %v1301_v26  ;;  %v1036_v31 = vmul.f32 1.442695, %v1021_v27 }
 0x240   : > { %1060 = vst.msk [vmem:[%s2145_s29 + $0x28] sm:$0xff] %vm1054_vm14, %v1051_v30  ;;  %v1091_v34 = vmul.f32 %v1051_v30, %v1051_v30  ;;  %v1072_v38 = vsel %vm1054_vm14, %v1051_v30, 0.0 }
 0x241   : > { %1420 = vpow2.f32 %v1036_v31  ;;  %v1073_v45 = vadd.f32 %v1072_v38, %v1071_v41 }
 0x242   : > { %v1419_v35 = vpop.eup %1418  ;;  %v1103_v42 = vsel %vm1054_vm14, %v1091_v34, 0.0 }
 0x243   : > { %v1302_v39 = vadd.f32 -1.0, %v1419_v35  ;;  %v1104_v55 = vadd.f32 %v1103_v42, %v1102_v44 }
 0x245   : > { %v1052_v43 = vsel %vm1012_vm5, %v1001_v18, %v1302_v39 }
 0x246   : > { %v1074_v49 = vsel %vm1054_vm14, %v1052_v43, 0.0  ;;  %v1092_v51 = vmul.f32 %v1052_v43, %v1052_v43  ;;  %1061 = vst.msk [vmem:[%s2145_s29 + $0x30] sm:$0xff] %vm1054_vm14, %v1052_v43 }
 0x247   : > { %v1421_v54 = vpop.eup %1420  ;;  %v1075_v48 = vadd.f32 %v1074_v49, %v1073_v45 }
 0x248   : > { %v1105_v53 = vsel %vm1054_vm14, %v1092_v51, 0.0  ;;  %v1303_v56 = vadd.f32 -1.0, %v1421_v54 }
 0x249   : > { %v1106_v58 = vadd.f32 %v1105_v53, %v1104_v55 }
 0x24a   : > { %v1053_v57 = vsel %vm1013_vm6, %v1004_v23, %v1303_v56 }
 0x24b   : > { %1062 = vst.msk [vmem:[%s2145_s29 + $0x38] sm:$0xff] %vm1054_vm14, %v1053_v57  ;;  %v1076_v60 = vsel %vm1054_vm14, %v1053_v57, 0.0  ;;  %v1093_v46 = vmul.f32 %v1053_v57, %v1053_v57 }
 0x24c   : > { %v1077_v47 = vadd.f32 %v1076_v60, %v1075_v48 }
 0x24d   : > { %1449 = shalt.err (!%p1446_p3)
}
 0x24e   : > { %s1556_s29 = smov 128   ;;  %s1557_s11 = smov 8   ;;  %v1107_v61 = vsel %vm1054_vm14, %v1093_v46, 0.0  ;;  %v1078_v62 = vrot.slane %v1077_v47, 4  ;;  %vm1084_vm7 = vcmask 516096  }
 0x24f   : > { %1343 = dma.vmem_to_hbm [thread:$0]  (%p1633_p5), %s1138_s16, 1024, %s1140_s18, %s1117_s9, %s1556_s29, %s1556_s29, %s1557_s11   ;;  %v1108_v63 = vadd.f32 %v1107_v61, %v1106_v58 }
 0x250   : > { %v1079_v0 = vadd.f32 %v1078_v62, %v1077_v47  ;;  %s1151_s26 = scalar_lea.hbm %s2276_s5, %s1614_s25  ;;  %s1121_s28 = sand.u32 1, %s1614_s25  }
 0x251   : > { %v1109_v59 = vrot.slane %v1108_v63, 4  ;;  %s1164_s16 = scalar_lea.hbm %s2277_s6, %s1614_s25  ;;  %s254_s18 = scalar_lea.vmem [#allocation6], %s2141_s19 }
 0x252   : > { %v1080_v2 = vrot.slane %v1079_v0, 2  ;;  %s2211_s9 = sshll.u32 %s254_s18, 4  ;;  %s2213_s15 = sshll.u32 %s1151_s26, 4  ;;  %s1154_s9 = int_to_ptr.vmem [resolvable:$true] %s2211_s9  ;;  %s1156_s15 = int_to_ptr.hbm [resolvable:$true] %s2213_s15 }
 0x253   : > { %v1110_v1 = vadd.f32 %v1109_v59, %v1108_v63  ;;  %s260_s20 = scalar_lea.vmem [#allocation8], %s2141_s19  ;;  %s2218_s29 = sshll.u32 %s1164_s16, 4  ;;  %s1169_s29 = int_to_ptr.hbm [resolvable:$true] %s2218_s29 }
 0x254   : > { %v1081_v3 = vadd.f32 %v1080_v2, %v1079_v0  ;;  %s2216_s10 = sshll.u32 %s260_s20, 4  ;;  %s1122_s25 = scalar_lea.sflag [#allocation7], %s1121_s28  ;;  %s1167_s10 = int_to_ptr.vmem [resolvable:$true] %s2216_s10 }
 0x255   : > { %v1111_v4 = vrot.slane %v1110_v1, 2  ;;  %s1464_s11 = sshra.s32 %s1156_s15, 4  ;;  %s1470_s26 = scalar_lea.hbm %s2276_s5, 2  ;;  %s1465_s11 = int_to_ptr.hbm [resolvable:$true] %s1464_s11 }
 0x256   : > { %v1082_v5 = vrot.slane %v1081_v3, 1  ;;  %s1466_s19 = scalar_lea.hbm %s1465_s11, 1  ;;  %p1471_p9 = scmp.lt.s32.totalorder %s1465_s11, %s2276_s5 }
 0x257   : > { %v1112_v50 = vadd.f32 %v1111_v4, %v1110_v1  ;;  %p1467_p4 = scmp.ne.s32.totalorder %s1465_s11, %s1466_s19  ;;  %p1472_p10 = scmp.lt.s32.totalorder %s1470_s26, %s1466_s19 }
 0x258   : > { %v1083_v6 = vadd.f32 %v1082_v5, %v1081_v3 }
 0x259   : > { %v1113_v7 = vrot.slane %v1112_v50, 1  ;;  %p1468_p7 = pnand %p1467_p4, %p1633_p5  ;;  %p1473_p11 = por %p1472_p10, %p1471_p9 }
 0x25a   : > { %1085 = vst.msk [vmem:[%s254_s18] sm:$0x1] %vm1084_vm7, %v1083_v6 }
 0x25b   : > { %v1114_v8 = vadd.f32 %v1113_v7, %v1112_v50  ;;  %p1469_p8 = pneg %p1468_p7 }
 0x25d   : > { %p1474_p12 = pnand %p1473_p11, %p1469_p8 }
 0x25f   : > { %1477 = shalt.err (!%p1474_p12)
}
 0x260   : > { %1344 = dma.vmem_to_hbm [thread:$0]  (%p1633_p5), %s1154_s9, 16, %s1156_s15, %s1122_s25   ;;  %1115 = vst.msk [vmem:[%s260_s20] sm:$0x1] %vm1084_vm7, %v1114_v8 }
 0x261   : > { %s1492_s28 = sshra.s32 %s1169_s29, 4  ;;  %s1498_s19 = scalar_lea.hbm %s2277_s6, 2  ;;  %s1493_s28 = int_to_ptr.hbm [resolvable:$true] %s1492_s28 }
 0x262   : > { %s1494_s16 = scalar_lea.hbm %s1493_s28, 1  ;;  %p1499_p2 = scmp.lt.s32.totalorder %s1493_s28, %s2277_s6 }
 0x263   : > { %p1495_p13 = scmp.ne.s32.totalorder %s1493_s28, %s1494_s16  ;;  %p1500_p3 = scmp.lt.s32.totalorder %s1498_s19, %s1494_s16 }
 0x265   : > { %p1496_p0 = pnand %p1495_p13, %p1633_p5  ;;  %p1501_p4 = por %p1500_p3, %p1499_p2 }
 0x267   : > { %p1497_p1 = pneg %p1496_p0 }
 0x269   : > { %p1502_p7 = pnand %p1501_p4, %p1497_p1 }
 0x26b   : > { %1505 = shalt.err (!%p1502_p7)
}
 0x26c   : > { %1345 = dma.vmem_to_hbm [thread:$0]  (%p1633_p5), %s1167_s10, 16, %s1169_s29, %s1122_s25  }
 0x26d PF: > { %p1359_p8 = scmp.ge.s32.totalorder %s1544_s24, 2  ;;  %s1180_s9 = sand.u32 1, %s1532_s21  }
 0x26e   : > { %s1181_s15 = scalar_lea.sflag [#allocation5], %s1180_s9 }
 0x26f   : > { %p1350_p9 = pnand %p1359_p8, %p1637_p6 }
 0x271   : > { %p1351_p10 = pneg %p1350_p9 }
 0x273   : > { %1523 = dma.done.wait (%p1351_p10), %s1181_s15, 1024  }
 0x274   : > { %1525 = vsyncadd (%p1351_p10), %s1181_s15, 4294966272  ;;  %s2290_s20 = sadd.s32 4294967294, %s1544_s24  }
 0x275   : > { %s1190_s7 = sand.u32 1, %s2290_s20  }
 0x276   : > { %s1191_s26 = scalar_lea.sflag [#allocation7], %s1190_s7 }
 0x277   : > { %1527 = dma.done.wait (%p1351_p10), %s1191_s26, 32  }
 0x278   : > { %1529 = vsyncadd (%p1351_p10), %s1191_s26, 4294967264  ;;  %p20_p5 = scmp.ge.s32.totalorder %s1618_s27, 4   ;;  %s2291_s21 = smov %s1536_s22 }
 0x279   : > { %s2292_s22 = smov %s1540_s23  ;;  %s2293_s23 = smov %s1631_s30 }
 0x27a   : > { %s2294_s24 = smov %s1618_s27  ;;  %22 = sbr.rel (!%p20_p5) target bundleno = 5 (0x5), region = 105 }
 0x27f   :  { %1205 = vsyncpa [#allocation5], 1 }
 0x280   :  { %1207 = vsyncpa [#allocation5 + $0x1], 1 }
 0x281   :  { %1208 = vsyncpa [#allocation7], 1 }
 0x282   :  { %1210 = vsyncpa [#allocation7 + $0x1], 1 }

</bundles_post_ra>
